<compile_context>
chip_gen: v7x
topology: tpu7x:2x2x1
jax: 0.10.0
libtpu: 0.0.40
codegen_flags: <defaults>
</compile_context>

<pallas_src>
import functools

import jax
import jax.numpy as jnp
import numpy as np
from jax.experimental import pallas as pl
from jax.experimental.pallas import tpu as pltpu

LANE = 128


def _swish(v):
    return v * jax.nn.sigmoid(v)


def _pad_axis(a, axis, target):
    pad = target - a.shape[axis]
    if pad <= 0:
        return a
    widths = [(0, 0)] * a.ndim
    widths[axis] = (0, pad)
    return jnp.pad(a, widths)


def _interaction_kernel(
    x_ref, rbf_ref, sbf_ref, gat_ref, sca_ref,
    w_rbf_ref, w_sbf_ref,
    w_jikj_ref, b_jikj_ref,
    w_bil_ref,
    w_rb_ref, b_rb_ref,
    w_lin_ref, b_lin_ref,
    w_ra_ref, b_ra_ref,
    out_ref,
    *, compute_dtype,
):
    f32 = jnp.float32
    cd = compute_dtype

    def mm(a, b):
        # MXU matmul: optionally bf16 operands (v6e/v7x), always f32 accumulation.
        return jnp.dot(a.astype(cd), b.astype(cd), preferred_element_type=f32)

    x = x_ref[...]                              # [Ep, Hp], padded lanes are zero
    hp = x.shape[1]
    nb = w_sbf_ref.shape[1]                     # num_bilinear

    # --- fused lin_ji / lin_kj projection: single [Ep, 2*Hp] matmul ----------
    xx = _swish(mm(x, w_jikj_ref[...]) + b_jikj_ref[...])
    x_ji = xx[:, :hp]
    x_kj = xx[:, hp:]

    # --- rbf / sbf projections (tiny K; negligible) ---------------------------
    rbf_p = mm(rbf_ref[...], w_rbf_ref[...])    # [Ep, Hp]
    sbf_p = mm(sbf_ref[...], w_sbf_ref[...])    # [Tp, B]

    # rbf gate applied on the lane-resident projection output (no extra pass)
    x_kj = x_kj * rbf_p

    # --- gather x_kj[idx_kj] as one-hot matmul: [Tp, Ep] @ [Ep, Hp] -----------
    xk_g = mm(gat_ref[...], x_kj)               # [Tp, Hp]

    # --- bilinear einsum as ONE matmul with K = B*Hp --------------------------
    # p[:, j*Hp + l] = sbf_p[:, j] * xk_g[:, l];  w_bil[j*Hp + l, i] = W[i, j, l]
    p = jnp.concatenate([sbf_p[:, j:j + 1] * xk_g for j in range(nb)], axis=-1)
    acc = mm(p, w_bil_ref[...])                 # [Tp, Hp]

    # --- scatter-sum over idx_ji as one-hot matmul: [Ep, Tp] @ [Tp, Hp] -------
    x_kj_s = mm(sca_ref[...], acc)              # [Ep, Hp]

    h = x_ji + x_kj_s

    # --- residual layers before skip (weights / biases loaded once) ----------
    w_rb = w_rb_ref[...]
    b_rb = b_rb_ref[...]
    for i in range(w_rb.shape[0] // 2):
        t = _swish(mm(h, w_rb[2 * i]) + b_rb[2 * i])
        t = _swish(mm(t, w_rb[2 * i + 1]) + b_rb[2 * i + 1])
        h = h + t

    # --- skip connection -------------------------------------------------------
    h = _swish(mm(h, w_lin_ref[...]) + b_lin_ref[...]) + x

    # --- residual layers after skip -------------------------------------------
    w_ra = w_ra_ref[...]
    b_ra = b_ra_ref[...]
    for i in range(w_ra.shape[0] // 2):
        t = _swish(mm(h, w_ra[2 * i]) + b_ra[2 * i])
        t = _swish(mm(t, w_ra[2 * i + 1]) + b_ra[2 * i + 1])
        h = h + t

    out_ref[...] = h


def interaction_block_pallas(x, rbf, sbf, idx_kj, idx_ji, params,
                             compute_dtype=jnp.float32):
    f32 = jnp.float32
    E, H = x.shape
    T = sbf.shape[0]
    B = params["w_sbf"].shape[1]
    Hp = ((H + LANE - 1) // LANE) * LANE        # lane-dense hidden dim
    Ep = ((E + 7) // 8) * 8
    Tp = ((T + 7) // 8) * 8

    # ---- lane-dense (zero-padded) operands ------------------------------------
    x_pad = _pad_axis(_pad_axis(x, 1, Hp), 0, Ep)
    rbf_pad = _pad_axis(rbf, 0, Ep)
    sbf_pad = _pad_axis(sbf, 0, Tp)

    # gather / scatter as dense one-hot operators (fine at these synthetic sizes)
    gather_oh = _pad_axis(jax.nn.one_hot(idx_kj, Ep, dtype=f32), 0, Tp)      # [Tp, Ep]
    scatter_oh = _pad_axis(jax.nn.one_hot(idx_ji, Ep, dtype=f32).T, 1, Tp)   # [Ep, Tp]

    # ---- packed / zero-padded weights -----------------------------------------
    def pad_w(w):                       # [H_in, H_out] -> [Hp, Hp]
        return _pad_axis(_pad_axis(w, 0, Hp), 1, Hp)

    def pad_b(b):                       # [1, H] -> [1, Hp]
        return _pad_axis(b, -1, Hp)

    w_jikj = jnp.concatenate([pad_w(params["w_ji"]), pad_w(params["w_kj"])], axis=1)
    b_jikj = jnp.concatenate([pad_b(params["b_ji"]), pad_b(params["b_kj"])], axis=1)

    w_rbf = _pad_axis(params["w_rbf"], 1, Hp)                    # [num_radial, Hp]
    w_sbf = params["w_sbf"]                                      # [S*R, B]

    # torch W[i, j, l] -> [j, l, i], zero-pad l, i to Hp, flatten to [B*Hp, Hp]
    w_bil = jnp.transpose(params["w_bil_torch"], (1, 2, 0))
    w_bil = _pad_axis(_pad_axis(w_bil, 1, Hp), 2, Hp).reshape(B * Hp, Hp)

    w_rb = _pad_axis(_pad_axis(params["w_res_before"], 1, Hp), 2, Hp)
    b_rb = _pad_axis(params["b_res_before"], 2, Hp)
    w_lin = pad_w(params["w_lin"])
    b_lin = pad_b(params["b_lin"])
    w_ra = _pad_axis(_pad_axis(params["w_res_after"], 1, Hp), 2, Hp)
    b_ra = _pad_axis(params["b_res_after"], 2, Hp)

    inputs = (
        x_pad, rbf_pad, sbf_pad, gather_oh, scatter_oh,
        w_rbf, w_sbf,
        w_jikj, b_jikj,
        w_bil,
        w_rb, b_rb,
        w_lin, b_lin,
        w_ra, b_ra,
    )

    vmem_spec = pl.BlockSpec(memory_space=pltpu.MemorySpace.VMEM)
    kernel = functools.partial(_interaction_kernel, compute_dtype=compute_dtype)
    out = pl.pallas_call(
        kernel,
        out_shape=jax.ShapeDtypeStruct((Ep, Hp), f32),
        in_specs=[vmem_spec] * len(inputs),
        out_specs=vmem_spec,
        compiler_params=pltpu.CompilerParams(vmem_limit_bytes=64 * 1024 * 1024),
    )(*inputs)
    return out[:E, :H]


def interaction_block_ref(x, rbf, sbf, idx_kj, idx_ji, params):
    """Pure-JAX reference mirroring the PyTorch forward exactly."""
    rbf_p = rbf @ params["w_rbf"]
    sbf_p = sbf @ params["w_sbf"]
    x_ji = _swish(x @ params["w_ji"] + params["b_ji"])
    x_kj = _swish(x @ params["w_kj"] + params["b_kj"])
    x_kj = x_kj * rbf_p
    t = jnp.einsum("wj,wl,ijl->wi", sbf_p, x_kj[idx_kj], params["w_bil_torch"])
    x_kj = jax.ops.segment_sum(t, idx_ji, num_segments=x.shape[0])
    h = x_ji + x_kj
    wb, bb = params["w_res_before"], params["b_res_before"]
    for i in range(wb.shape[0] // 2):
        u = _swish(h @ wb[2 * i] + bb[2 * i])
        u = _swish(u @ wb[2 * i + 1] + bb[2 * i + 1])
        h = h + u
    h = _swish(h @ params["w_lin"] + params["b_lin"]) + x
    wa, ba = params["w_res_after"], params["b_res_after"]
    for i in range(wa.shape[0] // 2):
        u = _swish(h @ wa[2 * i] + ba[2 * i])
        u = _swish(u @ wa[2 * i + 1] + ba[2 * i + 1])
        h = h + u
    return h


if __name__ == "__main__":
    # Module hyperparameters (small, consistent with DimeNet InteractionBlock)
    hidden_channels = 32
    num_bilinear = 8
    num_spherical = 7
    num_radial = 6
    num_before_skip = 1
    num_after_skip = 2

    E = 16   # number of edges (rows of x / rbf)
    T = 32   # number of triplets (rows of sbf / idx_kj / idx_ji)

    key = jax.random.PRNGKey(0)
    ks = jax.random.split(key, 16)

    def dense_w(k, fan_in, fan_out):
        return jax.random.normal(k, (fan_in, fan_out), jnp.float32) / np.sqrt(fan_in)

    params = {
        "w_rbf": dense_w(ks[0], num_radial, hidden_channels),
        "w_sbf": dense_w(ks[1], num_spherical * num_radial, num_bilinear),
        "w_ji": dense_w(ks[2], hidden_channels, hidden_channels),
        "b_ji": jnp.zeros((1, hidden_channels), jnp.float32),
        "w_kj": dense_w(ks[3], hidden_channels, hidden_channels),
        "b_kj": jnp.zeros((1, hidden_channels), jnp.float32),
        # torch layout: [hidden_out, num_bilinear, hidden_in], std = 2 / hidden
        "w_bil_torch": jax.random.normal(
            ks[4], (hidden_channels, num_bilinear, hidden_channels), jnp.float32
        ) * (2.0 / hidden_channels),
        "w_res_before": jnp.stack(
            [dense_w(k, hidden_channels, hidden_channels)
             for k in jax.random.split(ks[5], 2 * num_before_skip)]
        ),
        "b_res_before": jnp.zeros((2 * num_before_skip, 1, hidden_channels), jnp.float32),
        "w_lin": dense_w(ks[6], hidden_channels, hidden_channels),
        "b_lin": jnp.zeros((1, hidden_channels), jnp.float32),
        "w_res_after": jnp.stack(
            [dense_w(k, hidden_channels, hidden_channels)
             for k in jax.random.split(ks[7], 2 * num_after_skip)]
        ),
        "b_res_after": jnp.zeros((2 * num_after_skip, 1, hidden_channels), jnp.float32),
    }

    x = jax.random.normal(ks[8], (E, hidden_channels), jnp.float32)
    rbf = jax.random.normal(ks[9], (E, num_radial), jnp.float32)
    sbf = jax.random.normal(ks[10], (T, num_spherical * num_radial), jnp.float32)
    idx_kj = jax.random.randint(ks[11], (T,), 0, E)
    idx_ji = jax.random.randint(ks[12], (T,), 0, E)

    ref = interaction_block_ref(x, rbf, sbf, idx_kj, idx_ji, params)

    # f32 MXU path: tight tolerance against the reference.
    out = interaction_block_pallas(x, rbf, sbf, idx_kj, idx_ji, params,
                                   compute_dtype=jnp.float32)
    out = jax.block_until_ready(out)
    np.testing.assert_allclose(np.asarray(out), np.asarray(ref), rtol=1e-4, atol=1e-4)

    # bf16 MXU path (v6e/v7x recommendation): f32 accumulation, looser tolerance.
    out_bf16 = interaction_block_pallas(x, rbf, sbf, idx_kj, idx_ji, params,
                                        compute_dtype=jnp.bfloat16)
    out_bf16 = jax.block_until_ready(out_bf16)
    np.testing.assert_allclose(np.asarray(out_bf16), np.asarray(ref),
                               rtol=0.15, atol=0.15)

    print("KERNEL_OK")
</pallas_src>

<mosaic_0001>
module attributes {stable_mosaic.version = 11 : i64} {
  func.func @_interaction_kernel(%arg0: memref<16x128xf32, #tpu.memory_space<vmem>>, %arg1: memref<16x6xf32, #tpu.memory_space<vmem>>, %arg2: memref<32x42xf32, #tpu.memory_space<vmem>>, %arg3: memref<32x16xf32, #tpu.memory_space<vmem>>, %arg4: memref<16x32xf32, #tpu.memory_space<vmem>>, %arg5: memref<6x128xf32, #tpu.memory_space<vmem>>, %arg6: memref<42x8xf32, #tpu.memory_space<vmem>>, %arg7: memref<128x256xf32, #tpu.memory_space<vmem>>, %arg8: memref<1x256xf32, #tpu.memory_space<vmem>>, %arg9: memref<1024x128xf32, #tpu.memory_space<vmem>>, %arg10: memref<2x128x128xf32, #tpu.memory_space<vmem>>, %arg11: memref<2x1x128xf32, #tpu.memory_space<vmem>>, %arg12: memref<128x128xf32, #tpu.memory_space<vmem>>, %arg13: memref<1x128xf32, #tpu.memory_space<vmem>>, %arg14: memref<4x128x128xf32, #tpu.memory_space<vmem>>, %arg15: memref<4x1x128xf32, #tpu.memory_space<vmem>>, %arg16: memref<16x128xf32, #tpu.memory_space<vmem>>) attributes {dimension_semantics = [], scalar_prefetch = 0 : i64, scratch_operands = 0 : i64, tpu.core_type = #tpu.core_type<tc>} {
    %c0 = arith.constant 0 : index
    %c0_0 = arith.constant 0 : index
    %0 = vector.load %arg0[%c0, %c0_0] : memref<16x128xf32, #tpu.memory_space<vmem>>, vector<16x128xf32>
    %c0_1 = arith.constant 0 : index
    %c0_2 = arith.constant 0 : index
    %1 = vector.load %arg7[%c0_1, %c0_2] : memref<128x256xf32, #tpu.memory_space<vmem>>, vector<128x256xf32>
    %cst = arith.constant dense<0.000000e+00> : vector<16x256xf32>
    %2 = tpu.matmul %0, %1, %cst {dimension_numbers = #tpu.dot_dimension_numbers<[1], [0], [0], [1], [0, 0, 1, 1], [], []>} : vector<16x128xf32>, vector<128x256xf32>, vector<16x256xf32> -> vector<16x256xf32>
    %c0_3 = arith.constant 0 : index
    %c0_4 = arith.constant 0 : index
    %3 = vector.load %arg8[%c0_3, %c0_4] : memref<1x256xf32, #tpu.memory_space<vmem>>, vector<1x256xf32>
    %4 = vector.broadcast %3 : vector<1x256xf32> to vector<16x256xf32>
    %5 = arith.addf %2, %4 : vector<16x256xf32>
    %6 = arith.negf %5 : vector<16x256xf32>
    %7 = math.exp %6 : vector<16x256xf32>
    %cst_5 = arith.constant 1.000000e+00 : f32
    %8 = vector.broadcast %cst_5 : f32 to vector<16x256xf32>
    %9 = arith.addf %8, %7 : vector<16x256xf32>
    %10 = arith.divf %8, %9 : vector<16x256xf32>
    %11 = arith.mulf %5, %10 : vector<16x256xf32>
    %12 = vector.extract_strided_slice %11 {offsets = [0, 0], sizes = [16, 128], strides = [1, 1]} : vector<16x256xf32> to vector<16x128xf32>
    %13 = vector.extract_strided_slice %11 {offsets = [0, 128], sizes = [16, 128], strides = [1, 1]} : vector<16x256xf32> to vector<16x128xf32>
    %c0_6 = arith.constant 0 : index
    %c0_7 = arith.constant 0 : index
    %14 = vector.load %arg1[%c0_6, %c0_7] : memref<16x6xf32, #tpu.memory_space<vmem>>, vector<16x6xf32>
    %c0_8 = arith.constant 0 : index
    %c0_9 = arith.constant 0 : index
    %15 = vector.load %arg5[%c0_8, %c0_9] : memref<6x128xf32, #tpu.memory_space<vmem>>, vector<6x128xf32>
    %cst_10 = arith.constant dense<0.000000e+00> : vector<16x128xf32>
    %16 = tpu.matmul %14, %15, %cst_10 {dimension_numbers = #tpu.dot_dimension_numbers<[1], [0], [0], [1], [0, 0, 1, 1], [], []>} : vector<16x6xf32>, vector<6x128xf32>, vector<16x128xf32> -> vector<16x128xf32>
    %c0_11 = arith.constant 0 : index
    %c0_12 = arith.constant 0 : index
    %17 = vector.load %arg2[%c0_11, %c0_12] : memref<32x42xf32, #tpu.memory_space<vmem>>, vector<32x42xf32>
    %c0_13 = arith.constant 0 : index
    %c0_14 = arith.constant 0 : index
    %18 = vector.load %arg6[%c0_13, %c0_14] : memref<42x8xf32, #tpu.memory_space<vmem>>, vector<42x8xf32>
    %cst_15 = arith.constant dense<0.000000e+00> : vector<32x8xf32>
    %19 = tpu.matmul %17, %18, %cst_15 {dimension_numbers = #tpu.dot_dimension_numbers<[1], [0], [0], [1], [0, 0, 1, 1], [], []>} : vector<32x42xf32>, vector<42x8xf32>, vector<32x8xf32> -> vector<32x8xf32>
    %20 = arith.mulf %13, %16 : vector<16x128xf32>
    %c0_16 = arith.constant 0 : index
    %c0_17 = arith.constant 0 : index
    %21 = vector.load %arg3[%c0_16, %c0_17] : memref<32x16xf32, #tpu.memory_space<vmem>>, vector<32x16xf32>
    %cst_18 = arith.constant dense<0.000000e+00> : vector<32x128xf32>
    %22 = tpu.matmul %21, %20, %cst_18 {dimension_numbers = #tpu.dot_dimension_numbers<[1], [0], [0], [1], [0, 0, 1, 1], [], []>} : vector<32x16xf32>, vector<16x128xf32>, vector<32x128xf32> -> vector<32x128xf32>
    %23 = vector.extract_strided_slice %19 {offsets = [0, 0], sizes = [32, 1], strides = [1, 1]} : vector<32x8xf32> to vector<32x1xf32>
    %24 = vector.broadcast %23 : vector<32x1xf32> to vector<32x128xf32>
    %25 = arith.mulf %24, %22 : vector<32x128xf32>
    %26 = vector.extract_strided_slice %19 {offsets = [0, 1], sizes = [32, 1], strides = [1, 1]} : vector<32x8xf32> to vector<32x1xf32>
    %27 = vector.broadcast %26 : vector<32x1xf32> to vector<32x128xf32>
    %28 = arith.mulf %27, %22 : vector<32x128xf32>
    %29 = vector.extract_strided_slice %19 {offsets = [0, 2], sizes = [32, 1], strides = [1, 1]} : vector<32x8xf32> to vector<32x1xf32>
    %30 = vector.broadcast %29 : vector<32x1xf32> to vector<32x128xf32>
    %31 = arith.mulf %30, %22 : vector<32x128xf32>
    %32 = vector.extract_strided_slice %19 {offsets = [0, 3], sizes = [32, 1], strides = [1, 1]} : vector<32x8xf32> to vector<32x1xf32>
    %33 = vector.broadcast %32 : vector<32x1xf32> to vector<32x128xf32>
    %34 = arith.mulf %33, %22 : vector<32x128xf32>
    %35 = vector.extract_strided_slice %19 {offsets = [0, 4], sizes = [32, 1], strides = [1, 1]} : vector<32x8xf32> to vector<32x1xf32>
    %36 = vector.broadcast %35 : vector<32x1xf32> to vector<32x128xf32>
    %37 = arith.mulf %36, %22 : vector<32x128xf32>
    %38 = vector.extract_strided_slice %19 {offsets = [0, 5], sizes = [32, 1], strides = [1, 1]} : vector<32x8xf32> to vector<32x1xf32>
    %39 = vector.broadcast %38 : vector<32x1xf32> to vector<32x128xf32>
    %40 = arith.mulf %39, %22 : vector<32x128xf32>
    %41 = vector.extract_strided_slice %19 {offsets = [0, 6], sizes = [32, 1], strides = [1, 1]} : vector<32x8xf32> to vector<32x1xf32>
    %42 = vector.broadcast %41 : vector<32x1xf32> to vector<32x128xf32>
    %43 = arith.mulf %42, %22 : vector<32x128xf32>
    %44 = vector.extract_strided_slice %19 {offsets = [0, 7], sizes = [32, 1], strides = [1, 1]} : vector<32x8xf32> to vector<32x1xf32>
    %45 = vector.broadcast %44 : vector<32x1xf32> to vector<32x128xf32>
    %46 = arith.mulf %45, %22 : vector<32x128xf32>
    %47 = tpu.concatenate %25, %28, %31, %34, %37, %40, %43, %46 in 1 : vector<32x128xf32>, vector<32x128xf32>, vector<32x128xf32>, vector<32x128xf32>, vector<32x128xf32>, vector<32x128xf32>, vector<32x128xf32>, vector<32x128xf32> -> vector<32x1024xf32>
    %c0_19 = arith.constant 0 : index
    %c0_20 = arith.constant 0 : index
    %48 = vector.load %arg9[%c0_19, %c0_20] : memref<1024x128xf32, #tpu.memory_space<vmem>>, vector<1024x128xf32>
    %cst_21 = arith.constant dense<0.000000e+00> : vector<32x128xf32>
    %49 = tpu.matmul %47, %48, %cst_21 {dimension_numbers = #tpu.dot_dimension_numbers<[1], [0], [0], [1], [0, 0, 1, 1], [], []>} : vector<32x1024xf32>, vector<1024x128xf32>, vector<32x128xf32> -> vector<32x128xf32>
    %c0_22 = arith.constant 0 : index
    %c0_23 = arith.constant 0 : index
    %50 = vector.load %arg4[%c0_22, %c0_23] : memref<16x32xf32, #tpu.memory_space<vmem>>, vector<16x32xf32>
    %cst_24 = arith.constant dense<0.000000e+00> : vector<16x128xf32>
    %51 = tpu.matmul %50, %49, %cst_24 {dimension_numbers = #tpu.dot_dimension_numbers<[1], [0], [0], [1], [0, 0, 1, 1], [], []>} : vector<16x32xf32>, vector<32x128xf32>, vector<16x128xf32> -> vector<16x128xf32>
    %52 = arith.addf %12, %51 : vector<16x128xf32>
    %c0_25 = arith.constant 0 : index
    %c0_26 = arith.constant 0 : index
    %c0_27 = arith.constant 0 : index
    %53 = vector.load %arg10[%c0_25, %c0_26, %c0_27] : memref<2x128x128xf32, #tpu.memory_space<vmem>>, vector<2x128x128xf32>
    %c0_28 = arith.constant 0 : index
    %c0_29 = arith.constant 0 : index
    %c0_30 = arith.constant 0 : index
    %54 = vector.load %arg11[%c0_28, %c0_29, %c0_30] : memref<2x1x128xf32, #tpu.memory_space<vmem>>, vector<2x1x128xf32>
    %55 = vector.extract_strided_slice %53 {offsets = [0, 0, 0], sizes = [1, 128, 128], strides = [1, 1, 1]} : vector<2x128x128xf32> to vector<1x128x128xf32>
    %56 = vector.shape_cast %55 : vector<1x128x128xf32> to vector<128x128xf32>
    %cst_31 = arith.constant dense<0.000000e+00> : vector<16x128xf32>
    %57 = tpu.matmul %52, %56, %cst_31 {dimension_numbers = #tpu.dot_dimension_numbers<[1], [0], [0], [1], [0, 0, 1, 1], [], []>} : vector<16x128xf32>, vector<128x128xf32>, vector<16x128xf32> -> vector<16x128xf32>
    %58 = vector.extract_strided_slice %54 {offsets = [0, 0, 0], sizes = [1, 1, 128], strides = [1, 1, 1]} : vector<2x1x128xf32> to vector<1x1x128xf32>
    %59 = vector.shape_cast %58 : vector<1x1x128xf32> to vector<1x128xf32>
    %60 = vector.broadcast %59 : vector<1x128xf32> to vector<16x128xf32>
    %61 = arith.addf %57, %60 : vector<16x128xf32>
    %62 = arith.negf %61 : vector<16x128xf32>
    %63 = math.exp %62 : vector<16x128xf32>
    %cst_32 = arith.constant 1.000000e+00 : f32
    %64 = vector.broadcast %cst_32 : f32 to vector<16x128xf32>
    %65 = arith.addf %64, %63 : vector<16x128xf32>
    %66 = arith.divf %64, %65 : vector<16x128xf32>
    %67 = arith.mulf %61, %66 : vector<16x128xf32>
    %68 = vector.extract_strided_slice %53 {offsets = [1, 0, 0], sizes = [1, 128, 128], strides = [1, 1, 1]} : vector<2x128x128xf32> to vector<1x128x128xf32>
    %69 = vector.shape_cast %68 : vector<1x128x128xf32> to vector<128x128xf32>
    %cst_33 = arith.constant dense<0.000000e+00> : vector<16x128xf32>
    %70 = tpu.matmul %67, %69, %cst_33 {dimension_numbers = #tpu.dot_dimension_numbers<[1], [0], [0], [1], [0, 0, 1, 1], [], []>} : vector<16x128xf32>, vector<128x128xf32>, vector<16x128xf32> -> vector<16x128xf32>
    %71 = vector.extract_strided_slice %54 {offsets = [1, 0, 0], sizes = [1, 1, 128], strides = [1, 1, 1]} : vector<2x1x128xf32> to vector<1x1x128xf32>
    %72 = vector.shape_cast %71 : vector<1x1x128xf32> to vector<1x128xf32>
    %73 = vector.broadcast %72 : vector<1x128xf32> to vector<16x128xf32>
    %74 = arith.addf %70, %73 : vector<16x128xf32>
    %75 = arith.negf %74 : vector<16x128xf32>
    %76 = math.exp %75 : vector<16x128xf32>
    %cst_34 = arith.constant 1.000000e+00 : f32
    %77 = vector.broadcast %cst_34 : f32 to vector<16x128xf32>
    %78 = arith.addf %77, %76 : vector<16x128xf32>
    %79 = arith.divf %77, %78 : vector<16x128xf32>
    %80 = arith.mulf %74, %79 : vector<16x128xf32>
    %81 = arith.addf %52, %80 : vector<16x128xf32>
    %c0_35 = arith.constant 0 : index
    %c0_36 = arith.constant 0 : index
    %82 = vector.load %arg12[%c0_35, %c0_36] : memref<128x128xf32, #tpu.memory_space<vmem>>, vector<128x128xf32>
    %cst_37 = arith.constant dense<0.000000e+00> : vector<16x128xf32>
    %83 = tpu.matmul %81, %82, %cst_37 {dimension_numbers = #tpu.dot_dimension_numbers<[1], [0], [0], [1], [0, 0, 1, 1], [], []>} : vector<16x128xf32>, vector<128x128xf32>, vector<16x128xf32> -> vector<16x128xf32>
    %c0_38 = arith.constant 0 : index
    %c0_39 = arith.constant 0 : index
    %84 = vector.load %arg13[%c0_38, %c0_39] : memref<1x128xf32, #tpu.memory_space<vmem>>, vector<1x128xf32>
    %85 = vector.broadcast %84 : vector<1x128xf32> to vector<16x128xf32>
    %86 = arith.addf %83, %85 : vector<16x128xf32>
    %87 = arith.negf %86 : vector<16x128xf32>
    %88 = math.exp %87 : vector<16x128xf32>
    %cst_40 = arith.constant 1.000000e+00 : f32
    %89 = vector.broadcast %cst_40 : f32 to vector<16x128xf32>
    %90 = arith.addf %89, %88 : vector<16x128xf32>
    %91 = arith.divf %89, %90 : vector<16x128xf32>
    %92 = arith.mulf %86, %91 : vector<16x128xf32>
    %93 = arith.addf %92, %0 : vector<16x128xf32>
    %c0_41 = arith.constant 0 : index
    %c0_42 = arith.constant 0 : index
    %c0_43 = arith.constant 0 : index
    %94 = vector.load %arg14[%c0_41, %c0_42, %c0_43] : memref<4x128x128xf32, #tpu.memory_space<vmem>>, vector<4x128x128xf32>
    %c0_44 = arith.constant 0 : index
    %c0_45 = arith.constant 0 : index
    %c0_46 = arith.constant 0 : index
    %95 = vector.load %arg15[%c0_44, %c0_45, %c0_46] : memref<4x1x128xf32, #tpu.memory_space<vmem>>, vector<4x1x128xf32>
    %96 = vector.extract_strided_slice %94 {offsets = [0, 0, 0], sizes = [1, 128, 128], strides = [1, 1, 1]} : vector<4x128x128xf32> to vector<1x128x128xf32>
    %97 = vector.shape_cast %96 : vector<1x128x128xf32> to vector<128x128xf32>
    %cst_47 = arith.constant dense<0.000000e+00> : vector<16x128xf32>
    %98 = tpu.matmul %93, %97, %cst_47 {dimension_numbers = #tpu.dot_dimension_numbers<[1], [0], [0], [1], [0, 0, 1, 1], [], []>} : vector<16x128xf32>, vector<128x128xf32>, vector<16x128xf32> -> vector<16x128xf32>
    %99 = vector.extract_strided_slice %95 {offsets = [0, 0, 0], sizes = [1, 1, 128], strides = [1, 1, 1]} : vector<4x1x128xf32> to vector<1x1x128xf32>
    %100 = vector.shape_cast %99 : vector<1x1x128xf32> to vector<1x128xf32>
    %101 = vector.broadcast %100 : vector<1x128xf32> to vector<16x128xf32>
    %102 = arith.addf %98, %101 : vector<16x128xf32>
    %103 = arith.negf %102 : vector<16x128xf32>
    %104 = math.exp %103 : vector<16x128xf32>
    %cst_48 = arith.constant 1.000000e+00 : f32
    %105 = vector.broadcast %cst_48 : f32 to vector<16x128xf32>
    %106 = arith.addf %105, %104 : vector<16x128xf32>
    %107 = arith.divf %105, %106 : vector<16x128xf32>
    %108 = arith.mulf %102, %107 : vector<16x128xf32>
    %109 = vector.extract_strided_slice %94 {offsets = [1, 0, 0], sizes = [1, 128, 128], strides = [1, 1, 1]} : vector<4x128x128xf32> to vector<1x128x128xf32>
    %110 = vector.shape_cast %109 : vector<1x128x128xf32> to vector<128x128xf32>
    %cst_49 = arith.constant dense<0.000000e+00> : vector<16x128xf32>
    %111 = tpu.matmul %108, %110, %cst_49 {dimension_numbers = #tpu.dot_dimension_numbers<[1], [0], [0], [1], [0, 0, 1, 1], [], []>} : vector<16x128xf32>, vector<128x128xf32>, vector<16x128xf32> -> vector<16x128xf32>
    %112 = vector.extract_strided_slice %95 {offsets = [1, 0, 0], sizes = [1, 1, 128], strides = [1, 1, 1]} : vector<4x1x128xf32> to vector<1x1x128xf32>
    %113 = vector.shape_cast %112 : vector<1x1x128xf32> to vector<1x128xf32>
    %114 = vector.broadcast %113 : vector<1x128xf32> to vector<16x128xf32>
    %115 = arith.addf %111, %114 : vector<16x128xf32>
    %116 = arith.negf %115 : vector<16x128xf32>
    %117 = math.exp %116 : vector<16x128xf32>
    %cst_50 = arith.constant 1.000000e+00 : f32
    %118 = vector.broadcast %cst_50 : f32 to vector<16x128xf32>
    %119 = arith.addf %118, %117 : vector<16x128xf32>
    %120 = arith.divf %118, %119 : vector<16x128xf32>
    %121 = arith.mulf %115, %120 : vector<16x128xf32>
    %122 = arith.addf %93, %121 : vector<16x128xf32>
    %123 = vector.extract_strided_slice %94 {offsets = [2, 0, 0], sizes = [1, 128, 128], strides = [1, 1, 1]} : vector<4x128x128xf32> to vector<1x128x128xf32>
    %124 = vector.shape_cast %123 : vector<1x128x128xf32> to vector<128x128xf32>
    %cst_51 = arith.constant dense<0.000000e+00> : vector<16x128xf32>
    %125 = tpu.matmul %122, %124, %cst_51 {dimension_numbers = #tpu.dot_dimension_numbers<[1], [0], [0], [1], [0, 0, 1, 1], [], []>} : vector<16x128xf32>, vector<128x128xf32>, vector<16x128xf32> -> vector<16x128xf32>
    %126 = vector.extract_strided_slice %95 {offsets = [2, 0, 0], sizes = [1, 1, 128], strides = [1, 1, 1]} : vector<4x1x128xf32> to vector<1x1x128xf32>
    %127 = vector.shape_cast %126 : vector<1x1x128xf32> to vector<1x128xf32>
    %128 = vector.broadcast %127 : vector<1x128xf32> to vector<16x128xf32>
    %129 = arith.addf %125, %128 : vector<16x128xf32>
    %130 = arith.negf %129 : vector<16x128xf32>
    %131 = math.exp %130 : vector<16x128xf32>
    %cst_52 = arith.constant 1.000000e+00 : f32
    %132 = vector.broadcast %cst_52 : f32 to vector<16x128xf32>
    %133 = arith.addf %132, %131 : vector<16x128xf32>
    %134 = arith.divf %132, %133 : vector<16x128xf32>
    %135 = arith.mulf %129, %134 : vector<16x128xf32>
    %136 = vector.extract_strided_slice %94 {offsets = [3, 0, 0], sizes = [1, 128, 128], strides = [1, 1, 1]} : vector<4x128x128xf32> to vector<1x128x128xf32>
    %137 = vector.shape_cast %136 : vector<1x128x128xf32> to vector<128x128xf32>
    %cst_53 = arith.constant dense<0.000000e+00> : vector<16x128xf32>
    %138 = tpu.matmul %135, %137, %cst_53 {dimension_numbers = #tpu.dot_dimension_numbers<[1], [0], [0], [1], [0, 0, 1, 1], [], []>} : vector<16x128xf32>, vector<128x128xf32>, vector<16x128xf32> -> vector<16x128xf32>
    %139 = vector.extract_strided_slice %95 {offsets = [3, 0, 0], sizes = [1, 1, 128], strides = [1, 1, 1]} : vector<4x1x128xf32> to vector<1x1x128xf32>
    %140 = vector.shape_cast %139 : vector<1x1x128xf32> to vector<1x128xf32>
    %141 = vector.broadcast %140 : vector<1x128xf32> to vector<16x128xf32>
    %142 = arith.addf %138, %141 : vector<16x128xf32>
    %143 = arith.negf %142 : vector<16x128xf32>
    %144 = math.exp %143 : vector<16x128xf32>
    %cst_54 = arith.constant 1.000000e+00 : f32
    %145 = vector.broadcast %cst_54 : f32 to vector<16x128xf32>
    %146 = arith.addf %145, %144 : vector<16x128xf32>
    %147 = arith.divf %145, %146 : vector<16x128xf32>
    %148 = arith.mulf %142, %147 : vector<16x128xf32>
    %149 = arith.addf %122, %148 : vector<16x128xf32>
    %c0_55 = arith.constant 0 : index
    %c0_56 = arith.constant 0 : index
    %150 = vector.load %arg16[%c0_55, %c0_56] : memref<16x128xf32, #tpu.memory_space<vmem>>, vector<16x128xf32>
    tpu.vector_store %arg16[%c0_55, %c0_56], %149 {strides = array<i32>} : memref<16x128xf32, #tpu.memory_space<vmem>>, vector<16x128xf32>,
    return
  }
}

</mosaic_0001>

<bundles_post_ra>
// kernel: tpu_custom_call.1
= control target key start
LH: loop header
LB: loop body
LE: loop exit
PB: predicated region body
PF: predicated region fallthrough
CT: control target
= control target key end

     0   :  { %s4428_s0 = inlined_call_operand.hbm [shape: f32[16,128], index: 0, kind: input, shape index: {}]   ;;  %s4429_s1 = inlined_call_operand.hbm [shape: f32[16,6], index: 1, kind: input, shape index: {}]   ;;  %s4430_s2 = inlined_call_operand.hbm [shape: f32[32,42], index: 2, kind: input, shape index: {}]   ;;  %s4431_s3 = inlined_call_operand.hbm [shape: f32[32,16], index: 3, kind: input, shape index: {}]   ;;  %s4432_s4 = inlined_call_operand.hbm [shape: f32[16,32], index: 4, kind: input, shape index: {}]   ;;  %s4433_s5 = inlined_call_operand.hbm [shape: f32[6,128], index: 5, kind: input, shape index: {}]   ;;  %s4434_s6 = inlined_call_operand.hbm [shape: f32[42,8], index: 6, kind: input, shape index: {}]   ;;  %s4435_s7 = inlined_call_operand.hbm [shape: f32[128,256], index: 7, kind: input, shape index: {}]   ;;  %s4436_s8 = inlined_call_operand.hbm [shape: f32[1,256], index: 8, kind: input, shape index: {}]   ;;  %s4437_s9 = inlined_call_operand.hbm [shape: f32[1024,128], index: 9, kind: input, shape index: {}]   ;;  %s4438_s10 = inlined_call_operand.hbm [shape: f32[2,128,128], index: 10, kind: input, shape index: {}]   ;;  %s4439_s11 = inlined_call_operand.hbm [shape: f32[2,1,128], index: 11, kind: input, shape index: {}]   ;;  %s4440_s12 = inlined_call_operand.hbm [shape: f32[128,128], index: 12, kind: input, shape index: {}]   ;;  %s4441_s13 = inlined_call_operand.hbm [shape: f32[1,128], index: 13, kind: input, shape index: {}]   ;;  %s4442_s14 = inlined_call_operand.hbm [shape: f32[4,128,128], index: 14, kind: input, shape index: {}]   ;;  %s4443_s15 = inlined_call_operand.hbm [shape: f32[4,1,128], index: 15, kind: input, shape index: {}]   ;;  %s4444_s16 = inlined_call_operand.hbm [shape: f32[16,128], index: 16, kind: output, shape index: {}]  }
   0x1   :  { %4446 = sst [smem:[#allocation39_spill]] %s4428_s0 }
   0x2   :  { %21 = vsyncpa [#allocation3], 0 }
   0x3   :  { %22 = vsyncpa [#allocation6], 0 }
   0x4   :  { %23 = vsyncpa [#allocation9], 0 }
   0x5   :  { %24 = vsyncpa [#allocation12], 0 }
   0x6   :  { %25 = vsyncpa [#allocation15], 0 }
   0x7   :  { %26 = vsyncpa [#allocation18], 0 }
   0x8   :  { %27 = vsyncpa [#allocation21], 0 }
   0x9   :  { %28 = vsyncpa [#allocation24], 0 }
   0xa   :  { %29 = vsyncpa [#allocation27], 0 }
   0xb   :  { %30 = vsyncpa [#allocation4], 0  ;;  %s3857_s21 = smov [#allocation5]   ;;  %s3858_s23 = smov [#allocation8]  }
   0xc   :  { %s48_s22 = sshll.u32 %s3857_s21, 4  ;;  %s72_s24 = sshll.u32 %s3858_s23, 4  ;;  %s49_s22 = int_to_ptr.vmem [resolvable:$true] %s48_s22  ;;  %s3974_s24 = int_to_ptr.vmem [resolvable:$true] %s72_s24 }
   0xd   :  { %s3463_s27 = scalar_lea.hbm %s4429_s1, 256 }
   0xe   :  { %p3464_p0 = scmp.ne.s32.totalorder %s4429_s1, %s3463_s27  ;;  %p3467_p1 = scmp.lt.u32.totalorder %s3463_s27, %s4429_s1 }
  0x10   :  { %p3469_p2 = pnand %p3467_p1, %p3464_p0 }
  0x12   :  { %3472 = shalt.err (!%p3469_p2)
}
  0x13   :  { %s3473_s17 = scalar_lea.vmem %s49_s22, 256  ;;  %p3478_p4 = scmp.lt.s32.totalorder %s49_s22, %s49_s22 }
  0x14   :  { %p3474_p3 = scmp.ne.s32.totalorder %s49_s22, %s3473_s17  ;;  %p3479_p5 = scmp.lt.s32.totalorder %s3473_s17, %s3473_s17 }
  0x16   :  { %p3480_p6 = por %p3479_p5, %p3478_p4 }
  0x18   :  { %p3481_p7 = pnand %p3480_p6, %p3474_p3 }
  0x1a   :  { %3484 = shalt.err (!%p3481_p7)
}
  0x1b   :  { %s3859_s18 = smov 128   ;;  %s3860_s19 = smov 8  }
  0x1c   :  { %54 = dma.hbm_to_vmem [thread:$0]  %s4429_s1, 256, %s49_s22, [#allocation6], %s3859_s18, %s3859_s18, %s3860_s19  }
  0x1d   :  { %s3485_s26 = scalar_lea.hbm %s4431_s3, 512 }
  0x1e   :  { %p3486_p8 = scmp.ne.s32.totalorder %s4431_s3, %s3485_s26  ;;  %p3489_p9 = scmp.lt.u32.totalorder %s3485_s26, %s4431_s3 }
  0x20   :  { %p3491_p10 = pnand %p3489_p9, %p3486_p8 }
  0x22   :  { %3494 = shalt.err (!%p3491_p10)
}
  0x23   :  { %s3495_s0 = scalar_lea.vmem %s3974_s24, 512  ;;  %p3500_p12 = scmp.lt.s32.totalorder %s3974_s24, %s3974_s24 }
  0x24   :  { %p3496_p11 = scmp.ne.s32.totalorder %s3974_s24, %s3495_s0  ;;  %p3501_p13 = scmp.lt.s32.totalorder %s3495_s0, %s3495_s0 }
  0x26   :  { %p3502_p0 = por %p3501_p13, %p3500_p12 }
  0x28   :  { %p3503_p1 = pnand %p3502_p0, %p3496_p11 }
  0x2a   :  { %3506 = shalt.err (!%p3503_p1)
}
  0x2b   :  { %78 = dma.hbm_to_vmem [thread:$0]  %s4431_s3, 512, %s3974_s24, [#allocation9], %s3859_s18, %s3859_s18, %s3860_s19  }
  0x2c   :  { %s3861_s17 = smov [#allocation11]   ;;  %s3862_s21 = smov [#allocation14]  }
  0x2d   :  { %s97_s20 = sshll.u32 %s3861_s17, 4  ;;  %s118_s23 = sshll.u32 %s3862_s21, 4  ;;  %s98_s20 = int_to_ptr.vmem [resolvable:$true] %s97_s20  ;;  %s4011_s23 = int_to_ptr.vmem [resolvable:$true] %s118_s23 }
  0x2e   :  { %s3507_s27 = scalar_lea.hbm %s4433_s5, 128 }
  0x2f   :  { %p3508_p2 = scmp.ne.s32.totalorder %s4433_s5, %s3507_s27  ;;  %p3511_p3 = scmp.lt.u32.totalorder %s3507_s27, %s4433_s5 }
  0x31   :  { %p3513_p4 = pnand %p3511_p3, %p3508_p2 }
  0x33   :  { %3516 = shalt.err (!%p3513_p4)
}
  0x34   :  { %s3517_s3 = scalar_lea.vmem %s98_s20, 128  ;;  %p3522_p6 = scmp.lt.s32.totalorder %s98_s20, %s98_s20 }
  0x35   :  { %p3518_p5 = scmp.ne.s32.totalorder %s98_s20, %s3517_s3  ;;  %p3523_p7 = scmp.lt.s32.totalorder %s3517_s3, %s3517_s3 }
  0x37   :  { %p3524_p8 = por %p3523_p7, %p3522_p6 }
  0x39   :  { %p3525_p9 = pnand %p3524_p8, %p3518_p5 }
  0x3b   :  { %3528 = shalt.err (!%p3525_p9)
}
  0x3c   :  { %100 = dma.hbm_to_vmem [thread:$0]  %s4433_s5, 128, %s98_s20, [#allocation12]  }
  0x3d   :  { %s3529_s21 = scalar_lea.hbm %s4435_s7, 4096 }
  0x3e   :  { %p3530_p10 = scmp.ne.s32.totalorder %s4435_s7, %s3529_s21  ;;  %p3533_p11 = scmp.lt.u32.totalorder %s3529_s21, %s4435_s7 }
  0x40   :  { %p3535_p12 = pnand %p3533_p11, %p3530_p10 }
  0x42   :  { %3538 = shalt.err (!%p3535_p12)
}
  0x43   :  { %s3539_s29 = scalar_lea.vmem %s4011_s23, 4096  ;;  %p3544_p0 = scmp.lt.s32.totalorder %s4011_s23, %s4011_s23 }
  0x44   :  { %p3540_p13 = scmp.ne.s32.totalorder %s4011_s23, %s3539_s29  ;;  %p3545_p1 = scmp.lt.s32.totalorder %s3539_s29, %s3539_s29 }
  0x46   :  { %p3546_p2 = por %p3545_p1, %p3544_p0 }
  0x48   :  { %p3547_p3 = pnand %p3546_p2, %p3540_p13 }
  0x4a   :  { %3550 = shalt.err (!%p3547_p3)
}
  0x4b   :  { %s3863_s5 = smov 256   ;;  %s3864_s20 = smov 16  }
  0x4c   :  { %124 = dma.hbm_to_vmem [thread:$0]  %s4435_s7, 4096, %s4011_s23, [#allocation15], %s3863_s5, %s3863_s5, %s3864_s20  }
  0x4d   :  { %s3865_s3 = smov [#allocation17]   ;;  %s3866_s1 = smov [#allocation20]  }
  0x4e   :  { %s140_s24 = sshll.u32 %s3865_s3, 4  ;;  %s164_s22 = sshll.u32 %s3866_s1, 4  ;;  %s141_s24 = int_to_ptr.vmem [resolvable:$true] %s140_s24  ;;  %s4043_s22 = int_to_ptr.vmem [resolvable:$true] %s164_s22 }
  0x4f   :  { %s3551_s25 = scalar_lea.hbm %s4437_s9, 16384 }
  0x50   :  { %p3552_p4 = scmp.ne.s32.totalorder %s4437_s9, %s3551_s25  ;;  %p3555_p5 = scmp.lt.u32.totalorder %s3551_s25, %s4437_s9 }
  0x52   :  { %p3557_p6 = pnand %p3555_p5, %p3552_p4 }
  0x54   :  { %3560 = shalt.err (!%p3557_p6)
}
  0x55   :  { %s3561_s7 = scalar_lea.vmem %s141_s24, 16384  ;;  %p3566_p8 = scmp.lt.s32.totalorder %s141_s24, %s141_s24 }
  0x56   :  { %p3562_p7 = scmp.ne.s32.totalorder %s141_s24, %s3561_s7  ;;  %p3567_p9 = scmp.lt.s32.totalorder %s3561_s7, %s3561_s7 }
  0x58   :  { %p3568_p10 = por %p3567_p9, %p3566_p8 }
  0x5a   :  { %p3569_p11 = pnand %p3568_p10, %p3562_p7 }
  0x5c   :  { %3572 = shalt.err (!%p3569_p11)
}
  0x5d   :  { %146 = dma.hbm_to_vmem [thread:$0]  %s4437_s9, 16384, %s141_s24, [#allocation18], %s3859_s18, %s3859_s18, %s3860_s19  }
  0x5e   :  { %s3573_s3 = scalar_lea.hbm %s4439_s11, 32 }
  0x5f   :  { %p3574_p12 = scmp.ne.s32.totalorder %s4439_s11, %s3573_s3  ;;  %p3577_p13 = scmp.lt.u32.totalorder %s3573_s3, %s4439_s11 }
  0x61   :  { %p3579_p0 = pnand %p3577_p13, %p3574_p12 }
  0x63   :  { %3582 = shalt.err (!%p3579_p0)
}
  0x64   :  { %s3583_s26 = scalar_lea.vmem %s4043_s22, 32  ;;  %p3588_p2 = scmp.lt.s32.totalorder %s4043_s22, %s4043_s22 }
  0x65   :  { %p3584_p1 = scmp.ne.s32.totalorder %s4043_s22, %s3583_s26  ;;  %p3589_p3 = scmp.lt.s32.totalorder %s3583_s26, %s3583_s26 }
  0x67   :  { %p3590_p4 = por %p3589_p3, %p3588_p2 }
  0x69   :  { %p3591_p5 = pnand %p3590_p4, %p3584_p1 }
  0x6b   :  { %3594 = shalt.err (!%p3591_p5)
}
  0x6c   :  { %s3867_s9 = smov 1   ;;  %s3868_s28 = smov [#allocation23]  }
  0x6d   :  { %170 = dma.hbm_to_vmem [thread:$0]  %s4439_s11, 32, %s4043_s22, [#allocation21], %s3864_s20, %s3864_s20, %s3867_s9  }
  0x6e   :  { %s189_s29 = sshll.u32 %s3868_s28, 4  ;;  %s3869_s7 = smov [#allocation2]   ;;  %s190_s29 = int_to_ptr.vmem [resolvable:$true] %s189_s29 }
  0x6f   :  { %s36_s23 = sshll.u32 %s3869_s7, 4  ;;  %s3595_s0 = scalar_lea.hbm %s4441_s13, 16  ;;  %s37_s23 = int_to_ptr.vmem [resolvable:$true] %s36_s23 }
  0x70   :  { %p3596_p6 = scmp.ne.s32.totalorder %s4441_s13, %s3595_s0  ;;  %p3599_p7 = scmp.lt.u32.totalorder %s3595_s0, %s4441_s13 }
  0x72   :  { %p3601_p8 = pnand %p3599_p7, %p3596_p6 }
  0x74   :  { %3604 = shalt.err (!%p3601_p8)
}
  0x75   :  { %s3605_s11 = scalar_lea.vmem %s190_s29, 16  ;;  %s3609_s22 = scalar_lea.vmem %s190_s29, 32 }
  0x76   :  { %p3606_p9 = scmp.ne.s32.totalorder %s190_s29, %s3605_s11  ;;  %p3610_p10 = scmp.lt.s32.totalorder %s190_s29, %s190_s29 }
  0x77   :  { %p3611_p11 = scmp.lt.s32.totalorder %s3609_s22, %s3605_s11 }
  0x79   :  { %p3612_p12 = por %p3611_p11, %p3610_p10 }
  0x7b   :  { %p3613_p13 = pnand %p3612_p12, %p3606_p9 }
  0x7d   :  { %3616 = shalt.err (!%p3613_p13)
}
  0x7e   :  { %192 = dma.hbm_to_vmem [thread:$0]  %s4441_s13, 16, %s190_s29, [#allocation24]  }
  0x7f   :  { %s4447_s28 = sld [smem:[#allocation39_spill]] }
  0x85   :  { %s3617_s7 = scalar_lea.hbm %s4447_s28, 256 }
  0x86   :  { %p3618_p0 = scmp.ne.s32.totalorder %s4447_s28, %s3617_s7  ;;  %p3621_p1 = scmp.lt.u32.totalorder %s3617_s7, %s4447_s28 }
  0x88   :  { %p3623_p2 = pnand %p3621_p1, %p3618_p0 }
  0x8a   :  { %3626 = shalt.err (!%p3623_p2)
}
  0x8b   :  { %s3627_s1 = scalar_lea.vmem %s37_s23, 256  ;;  %p3632_p4 = scmp.lt.s32.totalorder %s37_s23, %s37_s23 }
  0x8c   :  { %p3628_p3 = scmp.ne.s32.totalorder %s37_s23, %s3627_s1  ;;  %p3633_p5 = scmp.lt.s32.totalorder %s3627_s1, %s3627_s1 }
  0x8e   :  { %p3634_p6 = por %p3633_p5, %p3632_p4 }
  0x90   :  { %p3635_p7 = pnand %p3634_p6, %p3628_p3 }
  0x92   :  { %3638 = shalt.err (!%p3635_p7)
}
  0x93   :  { %42 = dma.hbm_to_vmem [thread:$0]  %s4447_s28, 256, %s37_s23, [#allocation3], %s3859_s18, %s3859_s18, %s3860_s19  }
  0x94   :  { %s3870_s17 = smov [#allocation7]   ;;  %s3871_s11 = smov [#allocation10]  }
  0x95   :  { %s60_s21 = sshll.u32 %s3870_s17, 4  ;;  %s84_s22 = sshll.u32 %s3871_s11, 4  ;;  %s61_s21 = int_to_ptr.vmem [resolvable:$true] %s60_s21  ;;  %s85_s22 = int_to_ptr.vmem [resolvable:$true] %s84_s22 }
  0x96   :  { %s3639_s24 = scalar_lea.hbm %s4430_s2, 512 }
  0x97   :  { %p3640_p8 = scmp.ne.s32.totalorder %s4430_s2, %s3639_s24  ;;  %p3643_p9 = scmp.lt.u32.totalorder %s3639_s24, %s4430_s2 }
  0x99   :  { %p3645_p10 = pnand %p3643_p9, %p3640_p8 }
  0x9b   :  { %3648 = shalt.err (!%p3645_p10)
}
  0x9c   :  { %s3649_s23 = scalar_lea.vmem %s61_s21, 512  ;;  %p3654_p12 = scmp.lt.s32.totalorder %s61_s21, %s61_s21 }
  0x9d   :  { %p3650_p11 = scmp.ne.s32.totalorder %s61_s21, %s3649_s23  ;;  %p3655_p13 = scmp.lt.s32.totalorder %s3649_s23, %s3649_s23 }
  0x9f   :  { %p3656_p0 = por %p3655_p13, %p3654_p12 }
  0xa1   :  { %p3657_p1 = pnand %p3656_p0, %p3650_p11 }
  0xa3   :  { %3660 = shalt.err (!%p3657_p1)
}
  0xa4   :  { %66 = dma.hbm_to_vmem [thread:$0]  %s4430_s2, 512, %s61_s21, [#allocation6], %s3859_s18, %s3859_s18, %s3860_s19  }
  0xa5   :  { %s3661_s13 = scalar_lea.hbm %s4432_s4, 256 }
  0xa6   :  { %p3662_p2 = scmp.ne.s32.totalorder %s4432_s4, %s3661_s13  ;;  %p3665_p3 = scmp.lt.u32.totalorder %s3661_s13, %s4432_s4 }
  0xa8   :  { %p3667_p4 = pnand %p3665_p3, %p3662_p2 }
  0xaa   :  { %3670 = shalt.err (!%p3667_p4)
}
  0xab   :  { %s3671_s26 = scalar_lea.vmem %s85_s22, 256  ;;  %p3676_p6 = scmp.lt.s32.totalorder %s85_s22, %s85_s22 }
  0xac   :  { %p3672_p5 = scmp.ne.s32.totalorder %s85_s22, %s3671_s26  ;;  %p3677_p7 = scmp.lt.s32.totalorder %s3671_s26, %s3671_s26 }
  0xae   :  { %p3678_p8 = por %p3677_p7, %p3676_p6 }
  0xb0   :  { %p3679_p9 = pnand %p3678_p8, %p3672_p5 }
  0xb2   :  { %3682 = shalt.err (!%p3679_p9)
}
  0xb3   :  { %90 = dma.hbm_to_vmem [thread:$0]  %s4432_s4, 256, %s85_s22, [#allocation9], %s3859_s18, %s3859_s18, %s3860_s19  }
  0xb4   :  { %s3872_s24 = smov [#allocation13]   ;;  %s3873_s7 = smov [#allocation16]  }
  0xb5   :  { %s106_s27 = sshll.u32 %s3872_s24, 4  ;;  %s131_s5 = sshll.u32 %s3873_s7, 4  ;;  %s107_s27 = int_to_ptr.vmem [resolvable:$true] %s106_s27  ;;  %s132_s5 = int_to_ptr.vmem [resolvable:$true] %s131_s5 }
  0xb6   :  { %s3683_s28 = scalar_lea.hbm %s4434_s6, 768 }
  0xb7   :  { %p3684_p10 = scmp.ne.s32.totalorder %s4434_s6, %s3683_s28  ;;  %p3687_p11 = scmp.lt.u32.totalorder %s3683_s28, %s4434_s6 }
  0xb9   :  { %p3689_p12 = pnand %p3687_p11, %p3684_p10 }
  0xbb   :  { %3692 = shalt.err (!%p3689_p12)
}
  0xbc   :  { %s3693_s4 = scalar_lea.vmem %s107_s27, 768  ;;  %p3698_p0 = scmp.lt.s32.totalorder %s107_s27, %s107_s27 }
  0xbd   :  { %p3694_p13 = scmp.ne.s32.totalorder %s107_s27, %s3693_s4  ;;  %p3699_p1 = scmp.lt.s32.totalorder %s3693_s4, %s3693_s4 }
  0xbf   :  { %p3700_p2 = por %p3699_p1, %p3698_p0 }
  0xc1   :  { %p3701_p3 = pnand %p3700_p2, %p3694_p13 }
  0xc3   :  { %3704 = shalt.err (!%p3701_p3)
}
  0xc4   :  { %112 = dma.hbm_to_vmem [thread:$0]  %s4434_s6, 768, %s107_s27, [#allocation12], %s3859_s18, %s3859_s18, %s3860_s19  }
  0xc5   :  { %s3705_s25 = scalar_lea.hbm %s4436_s8, 32 }
  0xc6   :  { %p3706_p4 = scmp.ne.s32.totalorder %s4436_s8, %s3705_s25  ;;  %p3709_p5 = scmp.lt.u32.totalorder %s3705_s25, %s4436_s8 }
  0xc8   :  { %p3711_p6 = pnand %p3709_p5, %p3706_p4 }
  0xca   :  { %3714 = shalt.err (!%p3711_p6)
}
  0xcb   :  { %s3715_s7 = scalar_lea.vmem %s132_s5, 32  ;;  %p3720_p8 = scmp.lt.s32.totalorder %s132_s5, %s132_s5 }
  0xcc   :  { %p3716_p7 = scmp.ne.s32.totalorder %s132_s5, %s3715_s7  ;;  %p3721_p9 = scmp.lt.s32.totalorder %s3715_s7, %s3715_s7 }
  0xce   :  { %p3722_p10 = por %p3721_p9, %p3720_p8 }
  0xd0   :  { %p3723_p11 = pnand %p3722_p10, %p3716_p7 }
  0xd2   :  { %3726 = shalt.err (!%p3723_p11)
}
  0xd3   :  { %134 = dma.hbm_to_vmem [thread:$0]  %s4436_s8, 32, %s132_s5, [#allocation15]  }
  0xd4   :  { %s3874_s30 = smov [#allocation19]   ;;  %s3875_s28 = smov [#allocation22]  }
  0xd5   :  { %s152_s23 = sshll.u32 %s3874_s30, 4  ;;  %s176_s0 = sshll.u32 %s3875_s28, 4  ;;  %s153_s23 = int_to_ptr.vmem [resolvable:$true] %s152_s23  ;;  %s177_s0 = int_to_ptr.vmem [resolvable:$true] %s176_s0 }
  0xd6   :  { %s3727_s13 = scalar_lea.hbm %s4438_s10, 4096 }
  0xd7   :  { %p3728_p12 = scmp.ne.s32.totalorder %s4438_s10, %s3727_s13  ;;  %p3731_p13 = scmp.lt.u32.totalorder %s3727_s13, %s4438_s10 }
  0xd9   :  { %p3733_p0 = pnand %p3731_p13, %p3728_p12 }
  0xdb   :  { %3736 = shalt.err (!%p3733_p0)
}
  0xdc   :  { %s3737_s8 = scalar_lea.vmem %s153_s23, 4096  ;;  %p3742_p2 = scmp.lt.s32.totalorder %s153_s23, %s153_s23 }
  0xdd   :  { %p3738_p1 = scmp.ne.s32.totalorder %s153_s23, %s3737_s8  ;;  %p3743_p3 = scmp.lt.s32.totalorder %s3737_s8, %s3737_s8 }
  0xdf   :  { %p3744_p4 = por %p3743_p3, %p3742_p2 }
  0xe1   :  { %p3745_p5 = pnand %p3744_p4, %p3738_p1 }
  0xe3   :  { %3748 = shalt.err (!%p3745_p5)
}
  0xe4   :  { %158 = dma.hbm_to_vmem [thread:$0]  %s4438_s10, 4096, %s153_s23, [#allocation18], %s3859_s18, %s3859_s18, %s3860_s19  }
  0xe5   :  { %s3749_s2 = scalar_lea.hbm %s4440_s12, 2048 }
  0xe6   :  { %p3750_p6 = scmp.ne.s32.totalorder %s4440_s12, %s3749_s2  ;;  %p3753_p7 = scmp.lt.u32.totalorder %s3749_s2, %s4440_s12 }
  0xe8   :  { %p3755_p8 = pnand %p3753_p7, %p3750_p6 }
  0xea   :  { %3758 = shalt.err (!%p3755_p8)
}
  0xeb   :  { %s3759_s27 = scalar_lea.vmem %s177_s0, 2048  ;;  %p3764_p10 = scmp.lt.s32.totalorder %s177_s0, %s177_s0 }
  0xec   :  { %p3760_p9 = scmp.ne.s32.totalorder %s177_s0, %s3759_s27  ;;  %p3765_p11 = scmp.lt.s32.totalorder %s3759_s27, %s3759_s27 }
  0xee   :  { %p3766_p12 = por %p3765_p11, %p3764_p10 }
  0xf0   :  { %p3767_p13 = pnand %p3766_p12, %p3760_p9 }
  0xf2   :  { %3770 = shalt.err (!%p3767_p13)
}
  0xf3   :  { %182 = dma.hbm_to_vmem [thread:$0]  %s4440_s12, 2048, %s177_s0, [#allocation21], %s3859_s18, %s3859_s18, %s3860_s19  }
  0xf4   :  { %s3876_s23 = smov [#allocation25]   ;;  %s3877_s3 = smov [#allocation26]  }
  0xf5   :  { %s198_s28 = sshll.u32 %s3876_s23, 4  ;;  %s210_s1 = sshll.u32 %s3877_s3, 4  ;;  %s199_s28 = int_to_ptr.vmem [resolvable:$true] %s198_s28  ;;  %s211_s1 = int_to_ptr.vmem [resolvable:$true] %s210_s1 }
  0xf6   :  { %s3771_s22 = scalar_lea.hbm %s4442_s14, 8192 }
  0xf7   :  { %p3772_p0 = scmp.ne.s32.totalorder %s4442_s14, %s3771_s22  ;;  %p3775_p1 = scmp.lt.u32.totalorder %s3771_s22, %s4442_s14 }
  0xf9   :  { %p3777_p2 = pnand %p3775_p1, %p3772_p0 }
  0xfb   :  { %3780 = shalt.err (!%p3777_p2)
}
  0xfc   :  { %s3781_s12 = scalar_lea.vmem %s199_s28, 8192  ;;  %p3786_p4 = scmp.lt.s32.totalorder %s199_s28, %s199_s28 }
  0xfd   :  { %p3782_p3 = scmp.ne.s32.totalorder %s199_s28, %s3781_s12  ;;  %p3787_p5 = scmp.lt.s32.totalorder %s3781_s12, %s3781_s12 }
  0xff   :  { %p3788_p6 = por %p3787_p5, %p3786_p4 }
 0x101   :  { %p3789_p7 = pnand %p3788_p6, %p3782_p3 }
 0x103   :  { %3792 = shalt.err (!%p3789_p7)
}
 0x104   :  { %204 = dma.hbm_to_vmem [thread:$0]  %s4442_s14, 8192, %s199_s28, [#allocation24], %s3859_s18, %s3859_s18, %s3860_s19  }
 0x105   :  { %s3793_s2 = scalar_lea.hbm %s4443_s15, 64 }
 0x106   :  { %p3794_p8 = scmp.ne.s32.totalorder %s4443_s15, %s3793_s2  ;;  %p3797_p9 = scmp.lt.u32.totalorder %s3793_s2, %s4443_s15 }
 0x108   :  { %p3799_p10 = pnand %p3797_p9, %p3794_p8 }
 0x10a   :  { %3802 = shalt.err (!%p3799_p10)
}
 0x10b   :  { %s3803_s27 = scalar_lea.vmem %s211_s1, 64  ;;  %p3808_p12 = scmp.lt.s32.totalorder %s211_s1, %s211_s1 }
 0x10c   :  { %p3804_p11 = scmp.ne.s32.totalorder %s211_s1, %s3803_s27  ;;  %p3809_p13 = scmp.lt.s32.totalorder %s3803_s27, %s3803_s27 }
 0x10e   :  { %p3810_p0 = por %p3809_p13, %p3808_p12 }
 0x110   :  { %p3811_p1 = pnand %p3810_p0, %p3804_p11 }
 0x112   :  { %3814 = shalt.err (!%p3811_p1)
}
 0x113   :  { %216 = dma.hbm_to_vmem [thread:$0]  %s4443_s15, 64, %s211_s1, [#allocation27], %s3864_s20, %s3864_s20, %s3867_s9  }
 0x114   :  { %3837 = dma.done.wait [#allocation3], 256  }
 0x115   :  { %3838 = vsyncadd [#allocation3], 4294967040 }
 0x116   :  { %3839 = dma.done.wait [#allocation6], 768  }
 0x117   :  { %3840 = vsyncadd [#allocation6], 4294966528 }
 0x118   :  { %3841 = dma.done.wait [#allocation9], 768  }
 0x119   :  { %3842 = vsyncadd [#allocation9], 4294966528 }
 0x11a   :  { %3843 = dma.done.wait [#allocation12], 896  }
 0x11b   :  { %3844 = vsyncadd [#allocation12], 4294966400 }
 0x11c   :  { %3845 = dma.done.wait [#allocation15], 4128  }
 0x11d   :  { %3846 = vsyncadd [#allocation15], 4294963168 }
 0x11e   :  { %3847 = dma.done.wait [#allocation18], 20480  }
 0x11f   :  { %3848 = vsyncadd [#allocation18], 4294946816 }
 0x120   :  { %3849 = dma.done.wait [#allocation21], 2080  }
 0x121   :  { %3850 = vsyncadd [#allocation21], 4294965216 }
 0x122   :  { %3851 = dma.done.wait [#allocation24], 8208  }
 0x123   :  { %3852 = vsyncadd [#allocation24], 4294959088 }
 0x124   :  { %3853 = dma.done.wait [#allocation27], 64  }
 0x125   :  { %3854 = vsyncadd [#allocation27], 4294967232  ;;  %v3878_v0 = vmov 0.0   ;;  %v268_v1 = vld [vmem:[#allocation14 + $0x8] sm:$0xff]  ;;  %v270_v2 = vld [vmem:[#allocation14 + $0x18] sm:$0xff]  ;;  %vm426_vm0 = vcmask 1045504  }
 0x126   :  { %375 = vmatprep.mubr.f32.mxu0 %v3878_v0  ;;  %v267_v3 = vld [vmem:[#allocation14] sm:$0xff]  ;;  %v2913_v4 = vpack.c.bf16 %v270_v2, %v268_v1  ;;  %v269_v5 = vld [vmem:[#allocation14 + $0x10] sm:$0xff]  ;;  %v272_v6 = vld [vmem:[#allocation14 + $0x28] sm:$0xff]  ;;  %vm419_vm1 = vcmask 48128   ;;  %vm528_vm2 = vcmask 1041408   ;;  %vm515_vm3 = vcmask 343040  }
 0x127   :  { %v274_v7 = vld [vmem:[#allocation14 + $0x38] sm:$0xff]  ;;  %v2915_v8 = vpack.c.bf16 %v269_v5, %v267_v3  ;;  %v271_v10 = vld [vmem:[#allocation14 + $0x20] sm:$0xff]  ;;  %v273_v11 = vld [vmem:[#allocation14 + $0x30] sm:$0xff]  ;;  %vm3879_vm4 = vmmov 1   ;;  %vm623_vm6 = vcmask 130048   ;;  %vm1355_vm7 = vcmask 261120  }
 0x128   :  { %v2917_v9 = vpack.c.bf16 %v274_v7, %v272_v6  ;;  %v276_v12 = vld [vmem:[#allocation14 + $0x48] sm:$0xff]  ;;  %2914 = vmatprep.subr.bf16.mxu0 %v2913_v4  ;;  %v278_v13 = vld [vmem:[#allocation14 + $0x58] sm:$0xff]  ;;  %v2919_v14 = vpack.c.bf16 %v273_v11, %v271_v10  ;;  %v275_v16 = vld [vmem:[#allocation14 + $0x40] sm:$0xff]  ;;  %v3880_v4 = vmov 1   ;;  %v3881_v6 = vmov 0   ;;  %s3888_s15 = smov [#allocation28]  }
 0x129   :  { %2916 = vmatpush1.bf16.msra.mxu0 %v2915_v8  ;;  %v2921_v15 = vpack.c.bf16 %v278_v13, %v276_v12  ;;  %v277_v17 = vld [vmem:[#allocation14 + $0x50] sm:$0xff]  ;;  %v280_v18 = vld [vmem:[#allocation14 + $0x68] sm:$0xff]  ;;  %v282_v19 = vld [vmem:[#allocation14 + $0x78] sm:$0xff]  ;;  %3355 = vset.pattern.permute.xlu1 %v3880_v4  ;;  %s2238_s20 = sshll.u32 %s3888_s15, 4  ;;  %s2239_s20 = int_to_ptr.vmem [resolvable:$true] %s2238_s20 }
 0x12a   :  { %2918 = vmatprep.subr.bf16.mxu0 %v2917_v9  ;;  %v2923_v20 = vpack.c.bf16 %v277_v17, %v275_v16  ;;  %v2925_v21 = vpack.c.bf16 %v282_v19, %v280_v18  ;;  %v279_v22 = vld [vmem:[#allocation14 + $0x60] sm:$0xff]  ;;  %v281_v23 = vld [vmem:[#allocation14 + $0x70] sm:$0xff]  ;;  %v284_v24 = vld [vmem:[#allocation14 + $0x88] sm:$0xff]  ;;  %3356 = vset.pattern.permute.xlu0 %v3881_v6  ;;  %v301_v9 = vlaneseq  ;;  %v3883_v16 = vmov 2   ;;  %s3815_s9 = scalar_lea.vmem %s2239_s20, 256  ;;  %p3820_p3 = scmp.lt.s32.totalorder %s2239_s20, %s2239_s20 }
 0x12b   :  { %v286_v25 = vld [vmem:[#allocation14 + $0x98] sm:$0xff]  ;;  %v283_v26 = vld [vmem:[#allocation14 + $0x80] sm:$0xff]  ;;  %v285_v27 = vld [vmem:[#allocation14 + $0x90] sm:$0xff]  ;;  %v2927_v30 = vpack.c.bf16 %v281_v23, %v279_v22  ;;  %v3884_v22 = vmov 5   ;;  %v3885_v23 = vmov 7   ;;  %p3816_p2 = scmp.ne.s32.totalorder %s2239_s20, %s3815_s9  ;;  %p3821_p4 = scmp.lt.s32.totalorder %s3815_s9, %s3815_s9 }
 0x12c   :  { %v418_v28 = vld [vmem:[#allocation11] sm:$0x3f]  ;;  %v509_v31 = vld [vmem:[#allocation13] sm:$0xff]  ;;  %v510_v32 = vld [vmem:[#allocation13 + $0x8] sm:$0xff]  ;;  %v2929_v34 = vpack.c.bf16 %v286_v25, %v284_v24  ;;  %v2931_v44 = vpack.c.bf16 %v285_v27, %v283_v26  ;;  %v4242_v10 = vshrl.u32 %v301_v9, 7 }
 0x12d   :  { %2920 = vmatpush1.bf16.msra.mxu0 %v2919_v14  ;;  %v416_v29 = vld [vmem:[#allocation5] sm:$0xff]  ;;  %2624 = vmatprep.subr.msk.mxu1 %vm426_vm0, %v418_v28  ;;  %v417_v33 = vld [vmem:[#allocation5 + $0x8] sm:$0xff]  ;;  %v2945_v36 = vpack.c.bf16 %v510_v32, %v509_v31  ;;  %v511_v37 = vld [vmem:[#allocation13 + $0x10] sm:$0xff]  ;;  %p3822_p5 = por %p3821_p4, %p3820_p3 }
 0x12e   :  { %2922 = vmatprep.subr.bf16.mxu0 %v2921_v15  ;;  %v288_v35 = vld [vmem:[#allocation14 + $0xa8] sm:$0xff]  ;;  %2625 = vmatpush3.msk.msra.mxu1 %vm426_vm0, %v418_v28  ;;  %v290_v39 = vld [vmem:[#allocation14 + $0xb8] sm:$0xff]  ;;  %v513_v41 = vld [vmem:[#allocation13 + $0x20] sm:$0xff]  ;;  %v307_v12 = vsub.s32 1, %v4242_v10  ;;  %v3882_v15 = vmov 3   ;;  %v3886_v28 = vmov 4  }
 0x12f   :  { %v512_v38 = vld [vmem:[#allocation13 + $0x18] sm:$0xff]  ;;  %2626 = vmatprep.mubr.msk.f32.mxu1 %vm419_vm1, %v416_v29  ;;  %v514_v42 = vld [vmem:[#allocation13 + $0x28] sm:$0x3]  ;;  %2946 = vmatprep.subr.bf16.mxu1 %v2945_v36  ;;  %v2933_v45 = vpack.c.bf16 %v290_v39, %v288_v35  ;;  %v287_v46 = vld [vmem:[#allocation14 + $0xa0] sm:$0xff]  ;;  %p3823_p6 = pnand %p3822_p5, %p3816_p2 }
 0x130   :  { %v2949_v40 = vpack.c.bf16 %v512_v38, %v511_v37  ;;  %2627 = vmatmul.mubr.msk.f32.vlgmr.msra.gmra.mrb[0].mxu1 %vm419_vm1, %v417_v33  ;;  %v505_v43 = vld [vmem:[#allocation7] sm:$0xff]  ;;  %v289_v47 = vld [vmem:[#allocation14 + $0xb0] sm:$0xff]  ;;  %v2953_v48 = vpack.c.bf16 %v514_v42, %v513_v41  ;;  %v292_v49 = vld [vmem:[#allocation14 + $0xc8] sm:$0xff] }
 0x131   :  { %2924 = vmatpush1.bf16.msra.mxu0 %v2923_v20  ;;  %2948 = vmatpush3.bf16.msra.mxu1 %v2945_v36  ;;  %v294_v50 = vld [vmem:[#allocation14 + $0xd8] sm:$0xff]  ;;  %vm2954_vm5 = vmpackc.low %vm528_vm2, %vm3879_vm4  ;;  %v2935_v51 = vpack.c.bf16 %v289_v47, %v287_v46  ;;  %v291_v53 = vld [vmem:[#allocation14 + $0xc0] sm:$0xff] }
 0x132   :  { %2926 = vmatprep.subr.bf16.mxu0 %v2925_v21  ;;  %2950 = vmatprep.subr.bf16.mxu1 %v2949_v40  ;;  %v2937_v52 = vpack.c.bf16 %v294_v50, %v292_v49  ;;  %v293_v54 = vld [vmem:[#allocation14 + $0xd0] sm:$0xff]  ;;  %v296_v55 = vld [vmem:[#allocation14 + $0xe8] sm:$0xff]  ;;  %v298_v56 = vld [vmem:[#allocation14 + $0xf8] sm:$0xff] }
 0x133   :  { %2641 = vmatprep.mubr.msk.f32.mxu1 %vm515_vm3, %v505_v43  ;;  %v2939_v57 = vpack.c.bf16 %v293_v54, %v291_v53  ;;  %v506_v58 = vld [vmem:[#allocation7 + $0x8] sm:$0xff]  ;;  %v2941_v59 = vpack.c.bf16 %v298_v56, %v296_v55  ;;  %v297_v61 = vld [vmem:[#allocation14 + $0xf0] sm:$0xff]  ;;  %v507_v62 = vld [vmem:[#allocation7 + $0x10] sm:$0xff] }
 0x134   :  { %v295_v60 = vld [vmem:[#allocation14 + $0xe0] sm:$0xff]  ;;  %v508_v1 = vld [vmem:[#allocation7 + $0x18] sm:$0xff]  ;;  %v265_v2 = vld [vmem:[#allocation2] sm:$0xff] }
 0x135   :  { %2928 = vmatpush1.bf16.msra.mxu0 %v2927_v30  ;;  %2952 = vmatpush3.bf16.msra.mxu1 %v2949_v40  ;;  %v2943_v63 = vpack.c.bf16 %v297_v61, %v295_v60  ;;  %v266_v3 = vld [vmem:[#allocation2 + $0x8] sm:$0xff]  ;;  %v619_v5 = vld [vmem:[#allocation8] sm:$0xff]  ;;  %v3887_v30 = vmov 6   ;;  %v621_v43 = vld [vmem:[#allocation8 + $0x10] sm:$0xff] }
 0x136   :  { %2930 = vmatprep.subr.bf16.mxu0 %v2929_v34  ;;  %2955 = vmatprep.subr.msk.bf16.mxu1 %vm2954_vm5, %v2953_v48  ;;  %v299_v13 = vld [vmem:[#allocation16] sm:$0x3]  ;;  %v902_v46 = vld [vmem:[#allocation17 + $0x88] sm:$0xff]  ;;  %v933_v47 = vld [vmem:[#allocation17 + $0x180] sm:$0xff] }
 0x137   :  { %v308_v18 = vrot.slane %v299_v13, %v307_v12  ;;  %v620_v42 = vld [vmem:[#allocation8 + $0x8] sm:$0xff]  ;;  %v934_v49 = vld [vmem:[#allocation17 + $0x188] sm:$0xff] }
 0x138   :  { %v885_v50 = vld [vmem:[#allocation17] sm:$0xff]  ;;  %v918_v55 = vld [vmem:[#allocation17 + $0x108] sm:$0xff]  ;;  %v936_v61 = vld [vmem:[#allocation17 + $0x198] sm:$0xff] }
 0x139   :  { %2932 = vmatpush1.bf16.msra.mxu0 %v2931_v44  ;;  %2958 = vmatpush3.bf16.msk.msra.mxu1 %vm2954_vm5, %v2953_v48  ;;  %v622_v44 = vld [vmem:[#allocation8 + $0x18] sm:$0xff]  ;;  %v917_v54 = vld [vmem:[#allocation17 + $0x100] sm:$0xff] }
 0x13a   :  { %2934 = vmatprep.subr.bf16.mxu0 %v2933_v45  ;;  %v901_v45 = vld [vmem:[#allocation17 + $0x80] sm:$0xff]  ;;  %v2997_v56 = vpack.c.bf16 %v918_v55, %v917_v54  ;;  %v890_v12 = vld [vmem:[#allocation17 + $0x28] sm:$0xff]  ;;  %v896_v54 = vld [vmem:[#allocation17 + $0x58] sm:$0xff] }
 0x13b   :  { %v2963_v48 = vpack.c.bf16 %v902_v46, %v901_v45  ;;  %v925_v45 = vld [vmem:[#allocation17 + $0x140] sm:$0xff]  ;;  %v926_v46 = vld [vmem:[#allocation17 + $0x148] sm:$0xff] }
 0x13c   :  { %2642 = vmatmul.mubr.msk.f32.vlgmr.msra.gmra.mrb[2].mxu1 %vm515_vm3, %v506_v58  ;;  %v904_v58 = vld [vmem:[#allocation17 + $0x98] sm:$0xff] }
 0x13d   :  { %2936 = vmatpush1.bf16.msra.mxu0 %v2935_v51  ;;  %2644 = vmatprep.mubr.msk.f32.mxu1 %vm515_vm3, %v507_v62  ;;  %v886_v51 = vld [vmem:[#allocation17 + $0x8] sm:$0xff]  ;;  %v887_v62 = vld [vmem:[#allocation17 + $0x10] sm:$0xff] }
 0x13e   :  { %2938 = vmatprep.subr.bf16.mxu0 %v2937_v52  ;;  %v2995_v52 = vpack.c.bf16 %v934_v49, %v933_v47  ;;  %v2965_v53 = vpack.c.bf16 %v886_v51, %v885_v50  ;;  %v3013_v47 = vpack.c.bf16 %v926_v46, %v925_v45  ;;  %v912_v49 = vld [vmem:[#allocation17 + $0xd8] sm:$0xff]  ;;  %v943_v50 = vld [vmem:[#allocation17 + $0x1d0] sm:$0xff] }
 0x140   :  { %2645 = vmatmul.mubr.msk.f32.gmra.mrb[4].mxu1 %vm515_vm3, %v508_v1 }
 0x141   :  { %2940 = vmatpush1.bf16.msra.mxu0 %v2939_v57  ;;  %2651 = vmatprep.mubr.msk.f32.mxu1 %vm623_vm6, %v619_v5  ;;  %v903_v57 = vld [vmem:[#allocation17 + $0x90] sm:$0xff] }
 0x142   :  { %2942 = vmatprep.subr.bf16.mxu0 %v2941_v59  ;;  %v935_v59 = vld [vmem:[#allocation17 + $0x190] sm:$0xff]  ;;  %v2967_v60 = vpack.c.bf16 %v904_v58, %v903_v57  ;;  %v928_v58 = vld [vmem:[#allocation17 + $0x158] sm:$0xff] }
 0x143   :  { %v2999_v1 = vpack.c.bf16 %v936_v61, %v935_v59  ;;  %v927_v57 = vld [vmem:[#allocation17 + $0x150] sm:$0xff]  ;;  %v945_v61 = vld [vmem:[#allocation17 + $0x1e0] sm:$0xff] }
 0x144   :  { %v3017_v59 = vpack.c.bf16 %v928_v58, %v927_v57  ;;  %v968_v58 = vld [vmem:[#allocation17 + $0x298] sm:$0xff] }
 0x145   :  { %2944 = vmatpush1.bf16.msra.mxu0 %v2943_v63  ;;  %v888_v63 = vld [vmem:[#allocation17 + $0x18] sm:$0xff] }
 0x146   :  { %2996 = vmatprep.subr.bf16.mxu0 %v2995_v52  ;;  %v944_v52 = vld [vmem:[#allocation17 + $0x1d8] sm:$0xff] }
 0x147   :  { %v3015_v55 = vpack.c.bf16 %v944_v52, %v943_v50  ;;  %v950_v50 = vld [vmem:[#allocation17 + $0x208] sm:$0xff] }
 0x148   :  { %376 = vmatmul.mubr.f32.vlgmr.msra.gmra.mrb[0].mxu0 %v265_v2  ;;  %v2969_v2 = vpack.c.bf16 %v888_v63, %v887_v62  ;;  %v946_v62 = vld [vmem:[#allocation17 + $0x1e8] sm:$0xff]  ;;  %v897_v63 = vld [vmem:[#allocation17 + $0x60] sm:$0xff] }
 0x149   :  { %381 = vmatprep.mubr.f32.mxu0 %v3878_v0  ;;  %2998 = vmatpush3.bf16.msra.mxu0 %v2997_v56  ;;  %v982_v52 = vld [vmem:[#allocation17 + $0x308] sm:$0xff] }
 0x14a   :  { %3000 = vmatprep.subr.bf16.mxu0 %v2999_v1  ;;  %v898_v1 = vld [vmem:[#allocation17 + $0x68] sm:$0xff] }
 0x14c   :  { %382 = vmatmul.mubr.f32.gmra.mrb[2].mxu0 %v266_v3  ;;  %v919_v3 = vld [vmem:[#allocation17 + $0x110] sm:$0xff] }
 0x203   :  { %v4238_v7 = vpop.f32.mrb[0].mxu1 }
 0x204   :  { %v4240_v8 = vpop.f32.mrb[1].mxu1 }
 0x20f   :  { %v2643_v0 = vpop.f32.mrb[2].mxu1 }
 0x210   :  { %750 = vperm.xlu1 %3355, %v2643_v0   ;;  %728 = vperm.xlu0 %3356, %v2643_v0   ;;  %v598_v11 = vpop.f32.mrb[3].mxu1 }
 0x213   :  { %v4245_v14 = vpop.f32.mrb[4].mxu1 }
 0x214   :  { %3357 = vset.pattern.permute.xlu1 %v3882_v15  ;;  %3358 = vset.pattern.permute.xlu0 %v3883_v16  ;;  %v4249_v17 = vpop.f32.mrb[5].mxu1 }
 0x215   :  { %790 = vperm.xlu1 %3357, %v2643_v0   ;;  %770 = vperm.xlu0 %3358, %v2643_v0  }
 0x219   :  { %3359 = vset.pattern.permute.xlu1 %v3884_v22  ;;  %3361 = vset.pattern.permute.xlu0 %v3885_v23 }
 0x21a   :  { %830 = vperm.xlu1 %3359, %v2643_v0   ;;  %870 = vperm.xlu0 %3361, %v2643_v0  }
 0x21b   :  { %v4251_v19 = vpop.f32.mrb[0].mxu0 }
 0x21c   :  { %v379_v20 = vpop.f32.mrb[1].mxu0 }
 0x21d   :  { %v380_v21 = vadd.f32 %v379_v20, %v308_v18 }
 0x21e   :  { %3360 = vset.pattern.permute.xlu1 %v3886_v28  ;;  %3363 = vset.pattern.permute.xlu0 %v3880_v4 }
 0x21f   :  { %v2259_v24 = vmul.f32 -1.442695, %v380_v21  ;;  %v4255_v25 = vpop.f32.mrb[2].mxu0  ;;  %810 = vperm.xlu1 %3360, %v2643_v0   ;;  %746 = vperm.xlu0 %3363, %v598_v11  }
 0x220   :  { %v385_v26 = vpop.f32.mrb[3].mxu0 }
 0x221   :  { %3388 = vpow2.f32 %v2259_v24  ;;  %v386_v27 = vadd.f32 %v385_v26, %v308_v18  ;;  %v922_v18 = vld [vmem:[#allocation17 + $0x128] sm:$0xff]  ;;  %v908_v24 = vld [vmem:[#allocation17 + $0xb8] sm:$0xff]  ;;  %v939_v26 = vld [vmem:[#allocation17 + $0x1b0] sm:$0xff] }
 0x223   :  { %v2261_v29 = vmul.f32 -1.442695, %v386_v27  ;;  %3362 = vset.pattern.permute.xlu1 %v3887_v30  ;;  %3364 = vset.pattern.permute.xlu0 %v3881_v6 }
 0x224   :  { %850 = vperm.xlu1 %3362, %v2643_v0   ;;  %723 = vperm.xlu0 %3364, %v598_v11   ;;  %v938_v0 = vld [vmem:[#allocation17 + $0x1a8] sm:$0xff] }
 0x225   :  { %3390 = vpow2.f32 %v2261_v29  ;;  %v891_v29 = vld [vmem:[#allocation17 + $0x30] sm:$0xff] }
 0x228   :  { %3365 = vset.pattern.permute.xlu1 %v3882_v15  ;;  %3367 = vset.pattern.permute.xlu0 %v3884_v22 }
 0x229   :  { %786 = vperm.xlu1 %3365, %v598_v11   ;;  %826 = vperm.xlu0 %3367, %v598_v11  }
 0x22b   :  { %v3389_v31 = vpop.eup %3388 }
 0x22c   :  { %v401_v32 = vadd.f32 1.0, %v3389_v31  ;;  %v892_v31 = vld [vmem:[#allocation17 + $0x38] sm:$0xff] }
 0x22d   :  { %3366 = vset.pattern.permute.xlu1 %v3883_v16  ;;  %3370 = vset.pattern.permute.xlu0 %v3887_v30 }
 0x22e   :  { %3392 = vrcp.f32 %v401_v32  ;;  %766 = vperm.xlu1 %3366, %v598_v11   ;;  %846 = vperm.xlu0 %3370, %v598_v11  }
 0x22f   :  { %v3391_v33 = vpop.eup %3390 }
 0x230   :  { %v403_v34 = vadd.f32 1.0, %v3391_v33  ;;  %v2977_v33 = vpack.c.bf16 %v892_v31, %v891_v29 }
 0x232   :  { %3394 = vrcp.f32 %v403_v34  ;;  %3368 = vset.pattern.permute.xlu1 %v3886_v28  ;;  %3372 = vset.pattern.permute.xlu0 %v3881_v6  ;;  %v923_v34 = vld [vmem:[#allocation17 + $0x130] sm:$0xff] }
 0x233   :  { %806 = vperm.xlu1 %3368, %v598_v11   ;;  %738 = vperm.xlu0 %3372, %v4245_v14  }
 0x237   :  { %3369 = vset.pattern.permute.xlu1 %v3885_v23  ;;  %3377 = vset.pattern.permute.xlu0 %v3882_v15 }
 0x238   :  { %v3393_v35 = vpop.eup %3392  ;;  %866 = vperm.xlu1 %3369, %v598_v11   ;;  %794 = vperm.xlu0 %3377, %v4249_v17   ;;  %v889_v11 = vld [vmem:[#allocation17 + $0x20] sm:$0xff] }
 0x239   :  { %v413_v36 = vmul.f32 %v3393_v35, %v380_v21  ;;  %v907_v21 = vld [vmem:[#allocation17 + $0xb0] sm:$0xff]  ;;  %v924_v35 = vld [vmem:[#allocation17 + $0x138] sm:$0xff] }
 0x23b   :  { %v617_v37 = vmul.f32 %v4240_v8, %v413_v36  ;;  %v937_v8 = vld [vmem:[#allocation17 + $0x1a0] sm:$0xff]  ;;  %v3009_v36 = vpack.c.bf16 %v924_v35, %v923_v34 }
 0x23c   :  { %v3395_v38 = vpop.eup %3394  ;;  %3371 = vset.pattern.permute.xlu1 %v3880_v4  ;;  %3378 = vset.pattern.permute.xlu0 %v3884_v22  ;;  %v3003_v13 = vpack.c.bf16 %v938_v0, %v937_v8  ;;  %v947_v8 = vld [vmem:[#allocation17 + $0x1f0] sm:$0xff]  ;;  %v948_v0 = vld [vmem:[#allocation17 + $0x1f8] sm:$0xff] }
 0x23d   :  { %v415_v39 = vmul.f32 %v3395_v38, %v386_v27  ;;  %758 = vperm.xlu1 %3371, %v4245_v14   ;;  %838 = vperm.xlu0 %3378, %v4245_v14   ;;  %v2975_v27 = vpack.c.bf16 %v908_v24, %v907_v21  ;;  %v941_v38 = vld [vmem:[#allocation17 + $0x1c0] sm:$0xff]  ;;  %v966_v21 = vld [vmem:[#allocation17 + $0x288] sm:$0xff] }
 0x23e   :  { %v997_v24 = vld [vmem:[#allocation17 + $0x380] sm:$0xff] }
 0x23f   :  { %v618_v40 = vmul.f32 %v4238_v7, %v415_v39  ;;  %v906_v7 = vld [vmem:[#allocation17 + $0xa8] sm:$0xff] }
 0x241   :  { %v2959_v41 = vpack.c.bf16 %v618_v40, %v617_v37  ;;  %3373 = vset.pattern.permute.xlu1 %v3882_v15  ;;  %3382 = vset.pattern.permute.xlu0 %v3886_v28  ;;  %v2973_v15 = vpack.c.bf16 %v890_v12, %v889_v11  ;;  %v910_v37 = vld [vmem:[#allocation17 + $0xc8] sm:$0xff]  ;;  %v899_v11 = vld [vmem:[#allocation17 + $0x70] sm:$0xff]  ;;  %v3023_v12 = vpack.c.bf16 %v948_v0, %v947_v8  ;;  %v969_v8 = vld [vmem:[#allocation17 + $0x2a0] sm:$0xff] }
 0x242   :  { %798 = vperm.xlu1 %3373, %v4245_v14   ;;  %814 = vperm.xlu0 %3382, %v4249_v17   ;;  %v942_v40 = vld [vmem:[#allocation17 + $0x1c8] sm:$0xff] }
 0x243   :  { %2960 = vmatprep.subr.bf16.mxu1 %v2959_v41 }
 0x244   :  { %2962 = vmatpush3.bf16.msra.mxu1 %v2959_v41  ;;  %v893_v41 = vld [vmem:[#allocation17 + $0x40] sm:$0xff] }
 0x245   :  { %2964 = vmatprep.subr.bf16.mxu1 %v2963_v48  ;;  %v911_v48 = vld [vmem:[#allocation17 + $0xd0] sm:$0xff] }
 0x246   :  { %3374 = vset.pattern.permute.xlu1 %v3883_v16  ;;  %3386 = vset.pattern.permute.xlu0 %v3887_v30  ;;  %v2983_v51 = vpack.c.bf16 %v912_v49, %v911_v48 }
 0x247   :  { %2652 = vmatmul.mubr.msk.f32.vlgmr.msra.gmra.mrb[6].mxu1 %vm623_vm6, %v620_v42  ;;  %778 = vperm.xlu1 %3374, %v4245_v14   ;;  %v894_v42 = vld [vmem:[#allocation17 + $0x48] sm:$0xff] }
 0x248   :  { %2654 = vmatprep.mubr.msk.f32.mxu1 %vm623_vm6, %v621_v43  ;;  %858 = vperm.xlu0 %3386, %v4245_v14   ;;  %v3011_v43 = vpack.c.bf16 %v942_v40, %v941_v38 }
 0x249   :  { %2966 = vmatpush3.bf16.msra.mxu1 %v2965_v53  ;;  %v895_v53 = vld [vmem:[#allocation17 + $0x50] sm:$0xff] }
 0x24a   :  { %2968 = vmatprep.subr.bf16.mxu1 %v2967_v60  ;;  %v2985_v56 = vpack.c.bf16 %v896_v54, %v895_v53  ;;  %v914_v60 = vld [vmem:[#allocation17 + $0xe8] sm:$0xff]  ;;  %v967_v54 = vld [vmem:[#allocation17 + $0x290] sm:$0xff] }
 0x24b   :  { %2655 = vmatmul.mubr.msk.f32.gmra.mrb[8].mxu1 %vm623_vm6, %v622_v44  ;;  %3375 = vset.pattern.permute.xlu1 %v3880_v4  ;;  %v920_v4 = vld [vmem:[#allocation17 + $0x118] sm:$0xff]  ;;  %v2981_v44 = vpack.c.bf16 %v894_v42, %v893_v41 }
 0x24c   :  { %754 = vperm.xlu1 %3375, %v4249_v17   ;;  %3387 = vset.pattern.permute.xlu0 %v3885_v23  ;;  %v3001_v5 = vpack.c.bf16 %v920_v4, %v919_v3  ;;  %v2989_v3 = vpack.c.bf16 %v898_v1, %v897_v63  ;;  %v929_v4 = vld [vmem:[#allocation17 + $0x160] sm:$0xff]  ;;  %v951_v1 = vld [vmem:[#allocation17 + $0x210] sm:$0xff] }
 0x24d   :  { %2970 = vmatpush3.bf16.msra.mxu1 %v2969_v2  ;;  %v3019_v2 = vpack.c.bf16 %v946_v62, %v945_v61 }
 0x24e   :  { %3002 = vmatpush3.bf16.msra.mxu0 %v3001_v5  ;;  %v930_v5 = vld [vmem:[#allocation17 + $0x168] sm:$0xff] }
 0x24f   :  { %3004 = vmatprep.subr.bf16.mxu0 %v3003_v13 }
 0x250   :  { %3376 = vset.pattern.permute.xlu1 %v3881_v6  ;;  %v905_v6 = vld [vmem:[#allocation17 + $0xa0] sm:$0xff] }
 0x251   :  { %733 = vperm.xlu1 %3376, %v4249_v17   ;;  %v2971_v9 = vpack.c.bf16 %v906_v7, %v905_v6  ;;  %v3021_v6 = vpack.c.bf16 %v930_v5, %v929_v4  ;;  %v916_v7 = vld [vmem:[#allocation17 + $0xf8] sm:$0xff] }
 0x252   :  { %v984_v4 = vld [vmem:[#allocation17 + $0x318] sm:$0xff] }
 0x253   :  { %2972 = vmatprep.subr.bf16.mxu1 %v2971_v9 }
 0x254   :  { %2974 = vmatpush3.bf16.msra.mxu1 %v2973_v15  ;;  %v931_v15 = vld [vmem:[#allocation17 + $0x170] sm:$0xff] }
 0x255   :  { %3379 = vset.pattern.permute.xlu1 %v3883_v16  ;;  %v921_v16 = vld [vmem:[#allocation17 + $0x120] sm:$0xff]  ;;  %2976 = vmatprep.subr.bf16.mxu1 %v2975_v27  ;;  %v998_v27 = vld [vmem:[#allocation17 + $0x388] sm:$0xff] }
 0x256   :  { %774 = vperm.xlu1 %3379, %v4249_v17   ;;  %v3005_v20 = vpack.c.bf16 %v922_v18, %v921_v16  ;;  %v932_v16 = vld [vmem:[#allocation17 + $0x178] sm:$0xff] }
 0x257   :  { %v3025_v18 = vpack.c.bf16 %v932_v16, %v931_v15 }
 0x258   :  { %3006 = vmatpush3.bf16.msra.mxu0 %v3005_v20  ;;  %2978 = vmatpush3.bf16.msra.mxu1 %v2977_v33  ;;  %v965_v20 = vld [vmem:[#allocation17 + $0x280] sm:$0xff] }
 0x25a   :  { %3380 = vset.pattern.permute.xlu1 %v3886_v28  ;;  %v940_v28 = vld [vmem:[#allocation17 + $0x1b8] sm:$0xff] }
 0x25b   :  { %818 = vperm.xlu1 %3380, %v4245_v14   ;;  %v3007_v32 = vpack.c.bf16 %v940_v28, %v939_v26  ;;  %v3027_v26 = vpack.c.bf16 %v966_v21, %v965_v20  ;;  %v3059_v28 = vpack.c.bf16 %v998_v27, %v997_v24  ;;  %v954_v24 = vld [vmem:[#allocation17 + $0x228] sm:$0xff] }
 0x25c   :  { %v986_v27 = vld [vmem:[#allocation17 + $0x328] sm:$0xff] }
 0x25d   :  { %3008 = vmatprep.subr.bf16.mxu0 %v3007_v32 }
 0x25e   :  { %3010 = vmatpush3.bf16.msra.mxu0 %v3009_v36 }
 0x25f   :  { %3381 = vset.pattern.permute.xlu1 %v3884_v22  ;;  %v909_v22 = vld [vmem:[#allocation17 + $0xc0] sm:$0xff]  ;;  %3012 = vmatprep.subr.bf16.mxu0 %v3011_v43 }
 0x260   :  { %834 = vperm.xlu1 %3381, %v4249_v17   ;;  %v2979_v39 = vpack.c.bf16 %v910_v37, %v909_v22 }
 0x262   :  { %2980 = vmatprep.subr.bf16.mxu1 %v2979_v39  ;;  %3014 = vmatpush3.bf16.msra.mxu0 %v3013_v47  ;;  %v949_v47 = vld [vmem:[#allocation17 + $0x200] sm:$0xff] }
 0x263   :  { %2982 = vmatpush3.bf16.msra.mxu1 %v2981_v44  ;;  %3016 = vmatprep.subr.bf16.mxu0 %v3015_v55 }
 0x264   :  { %3383 = vset.pattern.permute.xlu1 %v3885_v23  ;;  %2984 = vmatprep.subr.bf16.mxu1 %v2983_v51  ;;  %v981_v51 = vld [vmem:[#allocation17 + $0x300] sm:$0xff] }
 0x265   :  { %874 = vperm.xlu1 %3383, %v4249_v17   ;;  %v3061_v57 = vpack.c.bf16 %v982_v52, %v981_v51  ;;  %v955_v52 = vld [vmem:[#allocation17 + $0x230] sm:$0xff] }
 0x266   :  { %3018 = vmatpush3.bf16.msra.mxu0 %v3017_v59  ;;  %v999_v59 = vld [vmem:[#allocation17 + $0x390] sm:$0xff] }
 0x267   :  { %2986 = vmatpush3.bf16.msra.mxu1 %v2985_v56  ;;  %3020 = vmatprep.subr.bf16.mxu0 %v3019_v2  ;;  %v3029_v56 = vpack.c.bf16 %v950_v50, %v949_v47  ;;  %v952_v2 = vld [vmem:[#allocation17 + $0x218] sm:$0xff]  ;;  %v1003_v47 = vld [vmem:[#allocation17 + $0x3b0] sm:$0xff] }
 0x268   :  { %v3033_v15 = vpack.c.bf16 %v952_v2, %v951_v1  ;;  %v1005_v1 = vld [vmem:[#allocation17 + $0x3c0] sm:$0xff]  ;;  %v1006_v2 = vld [vmem:[#allocation17 + $0x3c8] sm:$0xff] }
 0x269   :  { %3384 = vset.pattern.permute.xlu1 %v3887_v30  ;;  %v913_v30 = vld [vmem:[#allocation17 + $0xe0] sm:$0xff] }
 0x26a   :  { %854 = vperm.xlu1 %3384, %v4249_v17   ;;  %v2987_v17 = vpack.c.bf16 %v914_v60, %v913_v30  ;;  %3022 = vmatpush3.bf16.msra.mxu0 %v3021_v6  ;;  %v1000_v30 = vld [vmem:[#allocation17 + $0x398] sm:$0xff] }
 0x26b   :  { %3024 = vmatprep.subr.bf16.mxu0 %v3023_v12  ;;  %v1001_v12 = vld [vmem:[#allocation17 + $0x3a0] sm:$0xff] }
 0x26c   :  { %2988 = vmatprep.subr.bf16.mxu1 %v2987_v17 }
 0x26d   :  { %2990 = vmatpush3.bf16.msra.mxu1 %v2989_v3  ;;  %v983_v3 = vld [vmem:[#allocation17 + $0x310] sm:$0xff] }
 0x26e   :  { %3385 = vset.pattern.permute.xlu1 %v3885_v23  ;;  %v915_v23 = vld [vmem:[#allocation17 + $0xf0] sm:$0xff]  ;;  %3026 = vmatpush3.bf16.msra.mxu0 %v3025_v18  ;;  %v3065_v16 = vpack.c.bf16 %v984_v4, %v983_v3  ;;  %v953_v18 = vld [vmem:[#allocation17 + $0x220] sm:$0xff] }
 0x26f   :  { %878 = vperm.xlu1 %3385, %v4245_v14   ;;  %v2991_v9 = vpack.c.bf16 %v916_v7, %v915_v23  ;;  %v900_v14 = vld [vmem:[#allocation17 + $0x78] sm:$0xff]  ;;  %3060 = vmatprep.subr.bf16.mxu0 %v3059_v28  ;;  %v3031_v23 = vpack.c.bf16 %v968_v58, %v967_v54  ;;  %v3063_v7 = vpack.c.bf16 %v1000_v30, %v999_v59  ;;  %v987_v58 = vld [vmem:[#allocation17 + $0x330] sm:$0xff] }
 0x270   :  { %v2993_v13 = vpack.c.bf16 %v900_v14, %v899_v11  ;;  %v970_v14 = vld [vmem:[#allocation17 + $0x2a8] sm:$0xff] }
 0x271   :  { %2992 = vmatprep.subr.bf16.mxu1 %v2991_v9 }
 0x272   :  { %2994 = vmatpush3.bf16.msra.mxu1 %v2993_v13  ;;  %v1002_v13 = vld [vmem:[#allocation17 + $0x3a8] sm:$0xff] }
 0x273   :  { %3028 = vmatprep.subr.bf16.mxu1 %v3027_v26  ;;  %v985_v26 = vld [vmem:[#allocation17 + $0x320] sm:$0xff] }
 0x274   :  { %v3069_v51 = vpack.c.bf16 %v986_v27, %v985_v26 }
 0x28f   :  { %v751_v29 = vpop.permute.xlu1 %750  ;;  %v729_v36 = vpop.permute.xlu0 %728 }
 0x294   :  { %v791_v31 = vpop.permute.xlu1 %790  ;;  %v771_v37 = vpop.permute.xlu0 %770 }
 0x299   :  { %v4305_v32 = vpop.permute.xlu1 %830  ;;  %v4313_v39 = vpop.permute.xlu0 %870 }
 0x29e   :  { %v4307_v33 = vpop.permute.xlu1 %810  ;;  %v747_v41 = vpop.permute.xlu0 %746 }
 0x2a3   :  { %v4309_v34 = vpop.permute.xlu1 %850  ;;  %v724_v43 = vpop.permute.xlu0 %723 }
 0x2a8   :  { %v787_v35 = vpop.permute.xlu1 %786  ;;  %v4321_v45 = vpop.permute.xlu0 %826 }
 0x2ad   :  { %v767_v22 = vpop.permute.xlu1 %766  ;;  %v4325_v48 = vpop.permute.xlu0 %846 }
 0x2b2   :  { %v4311_v38 = vpop.permute.xlu1 %806  ;;  %v4331_v60 = vpop.permute.xlu0 %738 }
 0x2b7   :  { %v4315_v40 = vpop.permute.xlu1 %866  ;;  %v795_v28 = vpop.permute.xlu0 %794 }
 0x2bc   :  { %v4317_v42 = vpop.permute.xlu1 %758 }
 0x2c1   :  { %v4319_v44 = vpop.permute.xlu1 %798 }
 0x2c6   :  { %v4323_v46 = vpop.permute.xlu1 %778 }
 0x2cb   :  { %v755_v49 = vpop.permute.xlu1 %754 }
 0x2d0   :  { %v734_v5 = vpop.permute.xlu1 %733 }
 0x2d5   :  { %v775_v50 = vpop.permute.xlu1 %774 }
 0x31a   :  { %v4327_v53 = vpop.f32.mrb[6].mxu1 }
 0x31b   :  { %v4329_v55 = vpop.f32.mrb[7].mxu1  ;;  %v762_v0 = vmul.f32 %v4327_v53, %v751_v29  ;;  %v802_v11 = vmul.f32 %v4327_v53, %v791_v31  ;;  %v742_v20 = vmul.f32 %v4327_v53, %v729_v36  ;;  %v782_v21 = vmul.f32 %v4327_v53, %v771_v37  ;;  %v1004_v36 = vld [vmem:[#allocation17 + $0x3b8] sm:$0xff] }
 0x31c   :  { %v761_v61 = vmul.f32 %v747_v41, %v4329_v55  ;;  %v801_v17 = vmul.f32 %v787_v35, %v4329_v55  ;;  %v741_v62 = vmul.f32 %v724_v43, %v4329_v55  ;;  %v781_v63 = vmul.f32 %v767_v22, %v4329_v55  ;;  %v971_v35 = vld [vmem:[#allocation17 + $0x2b0] sm:$0xff]  ;;  %v972_v43 = vld [vmem:[#allocation17 + $0x2b8] sm:$0xff] }
 0x31d   :  { %v3035_v29 = vpack.c.bf16 %v970_v14, %v969_v8  ;;  %v3067_v31 = vpack.c.bf16 %v1002_v13, %v1001_v12  ;;  %v3037_v37 = vpack.c.bf16 %v954_v24, %v953_v18  ;;  %v3039_v59 = vpack.c.bf16 %v972_v43, %v971_v35  ;;  %v989_v8 = vld [vmem:[#allocation17 + $0x340] sm:$0xff]  ;;  %v976_v12 = vld [vmem:[#allocation17 + $0x2d8] sm:$0xff]  ;;  %v1007_v13 = vld [vmem:[#allocation17 + $0x3d0] sm:$0xff]  ;;  %v4361_v24 = vpop.permute.xlu1 %818 }
 0x31e   :  { %v4337_v6 = vpop.f32.mrb[8].mxu1  ;;  %1077 = vmatprep.mubr.f32.mxu1 %v761_v61  ;;  %1162 = vmatprep.mubr.f32.mxu0 %v801_v17  ;;  %v3071_v30 = vpack.c.bf16 %v1004_v36, %v1003_v47  ;;  %v973_v61 = vld [vmem:[#allocation17 + $0x2c0] sm:$0xff]  ;;  %v3075_v14 = vpack.c.bf16 %v1006_v2, %v1005_v1  ;;  %v962_v47 = vld [vmem:[#allocation17 + $0x268] sm:$0xff]  ;;  %v996_v1 = vld [vmem:[#allocation17 + $0x378] sm:$0xff] }
 0x31f   :  { %v4339_v9 = vpop.f32.mrb[9].mxu1  ;;  %1078 = vmatmul.mubr.f32.vlgmr.msra.gmra.mrb[10].mxu1 %v741_v62  ;;  %1163 = vmatmul.mubr.f32.vlgmr.msra.gmra.mrb[4].mxu0 %v781_v63  ;;  %v764_v17 = vmul.f32 %v4337_v6, %v4317_v42  ;;  %v804_v62 = vmul.f32 %v4337_v6, %v4319_v44  ;;  %v974_v63 = vld [vmem:[#allocation17 + $0x2c8] sm:$0xff]  ;;  %v784_v42 = vmul.f32 %v4337_v6, %v4323_v46  ;;  %v975_v44 = vld [vmem:[#allocation17 + $0x2d0] sm:$0xff]  ;;  %v1009_v35 = vld [vmem:[#allocation17 + $0x3e0] sm:$0xff] }
 0x320   :  { %3030 = vmatpush3.bf16.msra.mxu1 %v3029_v56  ;;  %3062 = vmatpush3.bf16.msra.mxu0 %v3061_v57  ;;  %v763_v22 = vmul.f32 %v755_v49, %v4339_v9  ;;  %v803_v41 = vmul.f32 %v795_v28, %v4339_v9  ;;  %v743_v54 = vmul.f32 %v734_v5, %v4339_v9  ;;  %v956_v57 = vld [vmem:[#allocation17 + $0x238] sm:$0xff]  ;;  %v957_v5 = vld [vmem:[#allocation17 + $0x240] sm:$0xff]  ;;  %v991_v28 = vld [vmem:[#allocation17 + $0x350] sm:$0xff] }
 0x321   :  { %1082 = vmatprep.mubr.f32.mxu1 %v762_v0  ;;  %1167 = vmatprep.mubr.f32.mxu0 %v802_v11  ;;  %v783_v56 = vmul.f32 %v775_v50, %v4339_v9  ;;  %v988_v49 = vld [vmem:[#allocation17 + $0x338] sm:$0xff]  ;;  %v3041_v3 = vpack.c.bf16 %v956_v57, %v955_v52  ;;  %v990_v0 = vld [vmem:[#allocation17 + $0x348] sm:$0xff]  ;;  %v3043_v11 = vpack.c.bf16 %v974_v63, %v973_v61  ;;  %v961_v43 = vld [vmem:[#allocation17 + $0x260] sm:$0xff] }
 0x322   :  { %3032 = vmatprep.subr.bf16.mxu1 %v3031_v23  ;;  %3064 = vmatprep.subr.bf16.mxu0 %v3063_v7  ;;  %v3073_v4 = vpack.c.bf16 %v988_v49, %v987_v58  ;;  %v958_v23 = vld [vmem:[#allocation17 + $0x248] sm:$0xff]  ;;  %v744_v7 = vmul.f32 %v4337_v6, %v4331_v60  ;;  %v881_v60 = vmul.f32 %v4315_v40, %v4329_v55  ;;  %v979_v52 = vld [vmem:[#allocation17 + $0x2f0] sm:$0xff]  ;;  %v1012_v57 = vld [vmem:[#allocation17 + $0x3f8] sm:$0xff]  ;;  %v835_v58 = vpop.permute.xlu1 %834 }
 0x323   :  { %1083 = vmatmul.mubr.f32.gmra.mrb[12].mxu1 %v742_v20  ;;  %1168 = vmatmul.mubr.f32.gmra.mrb[6].mxu0 %v782_v21  ;;  %v3045_v46 = vpack.c.bf16 %v958_v23, %v957_v5  ;;  %v3077_v18 = vpack.c.bf16 %v990_v0, %v989_v8  ;;  %v959_v20 = vld [vmem:[#allocation17 + $0x250] sm:$0xff]  ;;  %v960_v21 = vld [vmem:[#allocation17 + $0x258] sm:$0xff]  ;;  %v3047_v26 = vpack.c.bf16 %v976_v12, %v975_v44  ;;  %v1010_v40 = vld [vmem:[#allocation17 + $0x3e8] sm:$0xff]  ;;  %v839_v5 = vpop.permute.xlu0 %838 }
 0x324   :  { %3034 = vmatpush3.bf16.msra.mxu1 %v3033_v15  ;;  %3066 = vmatpush3.bf16.msra.mxu0 %v3065_v16  ;;  %v1008_v15 = vld [vmem:[#allocation17 + $0x3d8] sm:$0xff]  ;;  %v841_v16 = vmul.f32 %v4321_v45, %v4329_v55  ;;  %v978_v45 = vld [vmem:[#allocation17 + $0x2e8] sm:$0xff]  ;;  %v3083_v50 = vpack.c.bf16 %v1010_v40, %v1009_v35  ;;  %v3053_v49 = vpack.c.bf16 %v962_v47, %v961_v43  ;;  %v995_v63 = vld [vmem:[#allocation17 + $0x370] sm:$0xff] }
 0x325   :  { %1087 = vmatprep.mubr.f32.mxu1 %v763_v22  ;;  %1172 = vmatprep.mubr.f32.mxu0 %v803_v41  ;;  %v3079_v27 = vpack.c.bf16 %v1008_v15, %v1007_v13  ;;  %v3049_v22 = vpack.c.bf16 %v960_v21, %v959_v20  ;;  %v821_v23 = vmul.f32 %v4311_v38, %v4329_v55  ;;  %v1353_v15 = vld [vmem:[#allocation10] sm:$0xff]  ;;  %v1443_v21 = vld [vmem:[#allocation19 + $0x20] sm:$0xff]  ;;  %v1452_v43 = vld [vmem:[#allocation19 + $0x68] sm:$0xff] }
 0x326   :  { %3036 = vmatprep.subr.bf16.mxu1 %v3035_v29  ;;  %3068 = vmatprep.subr.bf16.mxu0 %v3067_v31  ;;  %v992_v29 = vld [vmem:[#allocation17 + $0x358] sm:$0xff]  ;;  %v977_v31 = vld [vmem:[#allocation17 + $0x2e0] sm:$0xff]  ;;  %v882_v8 = vmul.f32 %v4327_v53, %v4313_v39  ;;  %v822_v44 = vmul.f32 %v4327_v53, %v4307_v33  ;;  %v862_v38 = vmul.f32 %v4327_v53, %v4309_v34  ;;  %v1449_v35 = vld [vmem:[#allocation19 + $0x50] sm:$0xff] }
 0x327   :  { %1088 = vmatmul.mubr.f32.gmra.mrb[14].mxu1 %v743_v54  ;;  %1173 = vmatmul.mubr.f32.gmra.mrb[8].mxu0 %v783_v56  ;;  %v3081_v41 = vpack.c.bf16 %v992_v29, %v991_v28  ;;  %v3051_v36 = vpack.c.bf16 %v978_v45, %v977_v31  ;;  %v980_v54 = vld [vmem:[#allocation17 + $0x2f8] sm:$0xff]  ;;  %v1011_v56 = vld [vmem:[#allocation17 + $0x3f0] sm:$0xff]  ;;  %v844_v12 = vmul.f32 %v4337_v6, %v839_v5  ;;  %v1447_v29 = vld [vmem:[#allocation19 + $0x40] sm:$0xff] }
 0x328   :  { %3038 = vmatpush3.bf16.msra.mxu1 %v3037_v37  ;;  %3070 = vmatpush3.bf16.msra.mxu0 %v3069_v51  ;;  %v993_v37 = vld [vmem:[#allocation17 + $0x360] sm:$0xff]  ;;  %v994_v51 = vld [vmem:[#allocation17 + $0x368] sm:$0xff]  ;;  %v3055_v61 = vpack.c.bf16 %v980_v54, %v979_v52  ;;  %v1450_v40 = vld [vmem:[#allocation19 + $0x58] sm:$0xff] }
 0x329   :  { %1092 = vmatprep.mubr.f32.mxu1 %v764_v17  ;;  %1177 = vmatprep.mubr.f32.mxu0 %v804_v62  ;;  %v3087_v17 = vpack.c.bf16 %v1012_v57, %v1011_v56  ;;  %v964_v62 = vld [vmem:[#allocation17 + $0x278] sm:$0xff]  ;;  %v1448_v31 = vld [vmem:[#allocation19 + $0x48] sm:$0xff] }
 0x32a   :  { %3040 = vmatprep.subr.bf16.mxu1 %v3039_v59  ;;  %3072 = vmatprep.subr.bf16.mxu0 %v3071_v30  ;;  %v3085_v59 = vpack.c.bf16 %v994_v51, %v993_v37  ;;  %v963_v30 = vld [vmem:[#allocation17 + $0x270] sm:$0xff]  ;;  %v3115_v45 = vpack.c.bf16 %v1448_v31, %v1447_v29 }
 0x32b   :  { %1093 = vmatmul.mubr.f32.gmra.mrb[16].mxu1 %v744_v7  ;;  %1178 = vmatmul.mubr.f32.gmra.mrb[10].mxu0 %v784_v42  ;;  %v3057_v2 = vpack.c.bf16 %v964_v62, %v963_v30  ;;  %v861_v7 = vmul.f32 %v4325_v48, %v4329_v55  ;;  %v842_v42 = vmul.f32 %v4327_v53, %v4305_v32 }
 0x32c   :  { %3042 = vmatpush3.bf16.msra.mxu1 %v3041_v3  ;;  %3074 = vmatpush3.bf16.msra.mxu0 %v3073_v4  ;;  %v3089_v3 = vpack.c.bf16 %v996_v1, %v995_v63  ;;  %v875_v4 = vpop.permute.xlu1 %874  ;;  %v843_v48 = vmul.f32 %v835_v58, %v4339_v9  ;;  %v824_v53 = vmul.f32 %v4337_v6, %v4361_v24 }
 0x32d   :  { %1247 = vmatprep.mubr.f32.mxu1 %v841_v16  ;;  %1332 = vmatprep.mubr.f32.mxu0 %v881_v60  ;;  %v883_v55 = vmul.f32 %v875_v4, %v4339_v9  ;;  %v1440_v16 = vld [vmem:[#allocation19 + $0x8] sm:$0xff]  ;;  %v1441_v60 = vld [vmem:[#allocation19 + $0x10] sm:$0xff] }
 0x32e   :  { %3044 = vmatprep.subr.bf16.mxu1 %v3043_v11  ;;  %3076 = vmatprep.subr.bf16.mxu0 %v3075_v14  ;;  %v815_v11 = vpop.permute.xlu0 %814 }
 0x32f   :  { %v823_v39 = vmul.f32 %v815_v11, %v4339_v9 }
 0x330   :  { %3046 = vmatpush3.bf16.msra.mxu1 %v3045_v46  ;;  %3078 = vmatpush3.bf16.msra.mxu0 %v3077_v18  ;;  %v855_v0 = vpop.permute.xlu1 %854  ;;  %v1442_v18 = vld [vmem:[#allocation19 + $0x18] sm:$0xff] }
 0x331   :  { %3048 = vmatprep.subr.bf16.mxu1 %v3047_v26  ;;  %3080 = vmatprep.subr.bf16.mxu0 %v3079_v27  ;;  %v863_v14 = vmul.f32 %v855_v0, %v4339_v9  ;;  %v1439_v9 = vld [vmem:[#allocation19] sm:$0xff]  ;;  %v3103_v20 = vpack.c.bf16 %v1442_v18, %v1441_v60  ;;  %v1444_v26 = vld [vmem:[#allocation19 + $0x28] sm:$0xff]  ;;  %v1445_v27 = vld [vmem:[#allocation19 + $0x30] sm:$0xff] }
 0x332   :  { %v859_v34 = vpop.permute.xlu0 %858  ;;  %v3099_v46 = vpack.c.bf16 %v1440_v16, %v1439_v9  ;;  %v3107_v24 = vpack.c.bf16 %v1444_v26, %v1443_v21 }
 0x333   :  { %v864_v13 = vmul.f32 %v4337_v6, %v859_v34 }
 0x334   :  { %3050 = vmatpush3.bf16.msra.mxu1 %v3049_v22  ;;  %3082 = vmatpush3.bf16.msra.mxu0 %v3081_v41  ;;  %v879_v32 = vpop.permute.xlu1 %878  ;;  %v3119_v22 = vpack.c.bf16 %v1450_v40, %v1449_v35  ;;  %v1451_v41 = vld [vmem:[#allocation19 + $0x60] sm:$0xff] }
 0x335   :  { %3052 = vmatprep.subr.bf16.mxu1 %v3051_v36  ;;  %3084 = vmatprep.subr.bf16.mxu0 %v3083_v50  ;;  %v884_v33 = vmul.f32 %v4337_v6, %v879_v32  ;;  %v1446_v6 = vld [vmem:[#allocation19 + $0x38] sm:$0xff]  ;;  %v3123_v47 = vpack.c.bf16 %v1452_v43, %v1451_v41 }
 0x336   :  { %v3111_v28 = vpack.c.bf16 %v1446_v6, %v1445_v27 }
 0x338   :  { %3054 = vmatpush3.bf16.msra.mxu1 %v3053_v49  ;;  %3086 = vmatpush3.bf16.msra.mxu0 %v3085_v59 }
 0x339   :  { %3056 = vmatprep.subr.bf16.mxu1 %v3055_v61  ;;  %3088 = vmatprep.subr.bf16.mxu0 %v3087_v17 }
 0x33c   :  { %3058 = vmatpush3.bf16.msra.mxu1 %v3057_v2  ;;  %3090 = vmatpush3.bf16.msra.mxu0 %v3089_v3 }
 0x33d   :  { %3100 = vmatprep.subr.bf16.mxu0 %v3099_v46 }
 0x33f   :  { %1248 = vmatmul.mubr.f32.vlgmr.msra.gmra.mrb[18].mxu1 %v821_v23  ;;  %1333 = vmatmul.mubr.f32.vlgmr.msra.gmra.mrb[12].mxu0 %v861_v7 }
 0x340   :  { %1252 = vmatprep.mubr.f32.mxu1 %v842_v42  ;;  %1337 = vmatprep.mubr.f32.mxu0 %v882_v8 }
 0x341   :  { %3102 = vmatpush3.bf16.msra.mxu0 %v3099_v46 }
 0x342   :  { %3104 = vmatprep.subr.bf16.mxu0 %v3103_v20 }
 0x343   :  { %1253 = vmatmul.mubr.f32.gmra.mrb[20].mxu1 %v822_v44  ;;  %1338 = vmatmul.mubr.f32.gmra.mrb[14].mxu0 %v862_v38 }
 0x344   :  { %1257 = vmatprep.mubr.f32.mxu1 %v843_v48  ;;  %1342 = vmatprep.mubr.f32.mxu0 %v883_v55 }
 0x345   :  { %3106 = vmatpush3.bf16.msra.mxu0 %v3103_v20 }
 0x346   :  { %3108 = vmatprep.subr.bf16.mxu0 %v3107_v24 }
 0x347   :  { %1258 = vmatmul.mubr.f32.gmra.mrb[22].mxu1 %v823_v39  ;;  %1343 = vmatmul.mubr.f32.gmra.mrb[16].mxu0 %v863_v14 }
 0x348   :  { %1262 = vmatprep.mubr.f32.mxu1 %v844_v12  ;;  %1347 = vmatprep.mubr.f32.mxu0 %v884_v33 }
 0x349   :  { %3110 = vmatpush3.bf16.msra.mxu0 %v3107_v24 }
 0x34a   :  { %3112 = vmatprep.subr.bf16.mxu0 %v3111_v28 }
 0x34b   :  { %1263 = vmatmul.mubr.f32.gmra.mrb[24].mxu1 %v824_v53  ;;  %1348 = vmatmul.mubr.f32.gmra.mrb[18].mxu0 %v864_v13 }
 0x34c   :  { %2665 = vmatprep.mubr.msk.f32.mxu1 %vm1355_vm7, %v1353_v15 }
 0x34d   :  { %3114 = vmatpush3.bf16.msra.mxu0 %v3111_v28 }
 0x34e   :  { %3116 = vmatprep.subr.bf16.mxu0 %v3115_v45 }
 0x351   :  { %3118 = vmatpush3.bf16.msra.mxu0 %v3115_v45 }
 0x352   :  { %3120 = vmatprep.subr.bf16.mxu0 %v3119_v22 }
 0x355   :  { %3122 = vmatpush3.bf16.msra.mxu0 %v3119_v22 }
 0x356   :  { %3124 = vmatprep.subr.bf16.mxu0 %v3123_v47 }
 0x359   :  { %3126 = vmatpush3.bf16.msra.mxu0 %v3123_v47 }
 0x3f2   :  { %v2348_v36 = vpop.f32.mrb[10].mxu1  ;;  %v2392_v50 = vpop.f32.mrb[4].mxu0 }
 0x3f3   :  { %v2349_v37 = vpop.f32.mrb[11].mxu1  ;;  %v2393_v51 = vpop.f32.mrb[5].mxu0 }
 0x3f4   :  { %v2350_v52 = vadd.f32 %v2349_v37, %v2348_v36  ;;  %v2394_v54 = vadd.f32 %v2393_v51, %v2392_v50  ;;  %v1354_v50 = vld [vmem:[#allocation10 + $0x8] sm:$0xff]  ;;  %v1453_v37 = vld [vmem:[#allocation19 + $0x70] sm:$0xff] }
 0x3f5   :  { %v1454_v51 = vld [vmem:[#allocation19 + $0x78] sm:$0xff] }
 0x3f6   :  { %v1165_v56 = vadd.f32 %v2394_v54, %v2350_v52  ;;  %v2351_v57 = vpop.f32.mrb[12].mxu1  ;;  %v2395_v58 = vpop.f32.mrb[6].mxu0  ;;  %v3127_v52 = vpack.c.bf16 %v1454_v51, %v1453_v37  ;;  %v303_v54 = vsub.s32 0, %v4242_v10  ;;  %v1667_v37 = vld [vmem:[#allocation22 + $0x10] sm:$0xff]  ;;  %v1668_v51 = vld [vmem:[#allocation22 + $0x18] sm:$0xff] }
 0x3f7   :  { %v2352_v49 = vpop.f32.mrb[13].mxu1  ;;  %v2396_v59 = vpop.f32.mrb[7].mxu0 }
 0x3f8   :  { %v2353_v30 = vadd.f32 %v2352_v49, %v2351_v57  ;;  %v2397_v61 = vadd.f32 %v2396_v59, %v2395_v58  ;;  %3128 = vmatprep.subr.bf16.mxu0 %v3127_v52 }
 0x3f9   :  { %3130 = vmatpush3.bf16.msra.mxu0 %v3127_v52  ;;  %v3167_v52 = vpack.c.bf16 %v1668_v51, %v1667_v37 }
 0x3fa   :  { %v1170_v17 = vadd.f32 %v2397_v61, %v2353_v30  ;;  %v2354_v62 = vpop.f32.mrb[14].mxu1  ;;  %v2398_v63 = vpop.f32.mrb[8].mxu0 }
 0x3fb   :  { %v2355_v1 = vpop.f32.mrb[15].mxu1  ;;  %v2399_v2 = vpop.f32.mrb[9].mxu0 }
 0x3fc   :  { %v2356_v3 = vadd.f32 %v2355_v1, %v2354_v62  ;;  %v2400_v4 = vadd.f32 %v2399_v2, %v2398_v63 }
 0x3fe   :  { %v1175_v5 = vadd.f32 %v2400_v4, %v2356_v3  ;;  %v2357_v23 = vpop.f32.mrb[16].mxu1  ;;  %v2401_v7 = vpop.f32.mrb[10].mxu0 }
 0x3ff   :  { %v2358_v42 = vpop.f32.mrb[17].mxu1  ;;  %v2402_v8 = vpop.f32.mrb[11].mxu0 }
 0x400   :  { %v2359_v0 = vadd.f32 %v2358_v42, %v2357_v23  ;;  %v2403_v44 = vadd.f32 %v2402_v8, %v2401_v7  ;;  %v1456_v7 = vld [vmem:[#allocation19 + $0x88] sm:$0xff]  ;;  %v1457_v8 = vld [vmem:[#allocation19 + $0x90] sm:$0xff] }
 0x402   :  { %v1180_v38 = vadd.f32 %v2403_v44, %v2359_v0  ;;  %v1458_v0 = vld [vmem:[#allocation19 + $0x98] sm:$0xff] }
 0x403   :  { %v3135_v44 = vpack.c.bf16 %v1458_v0, %v1457_v8 }
 0x412   :  { %v2436_v11 = vpop.f32.mrb[18].mxu1  ;;  %v2480_v48 = vpop.f32.mrb[12].mxu0 }
 0x413   :  { %v2437_v55 = vpop.f32.mrb[19].mxu1  ;;  %v2481_v32 = vpop.f32.mrb[13].mxu0 }
 0x414   :  { %v2438_v39 = vadd.f32 %v2437_v55, %v2436_v11  ;;  %v2482_v14 = vadd.f32 %v2481_v32, %v2480_v48  ;;  %v1460_v11 = vld [vmem:[#allocation19 + $0xa8] sm:$0xff]  ;;  %v1461_v55 = vld [vmem:[#allocation19 + $0xb0] sm:$0xff]  ;;  %v1462_v32 = vld [vmem:[#allocation19 + $0xb8] sm:$0xff] }
 0x416   :  { %v1250_v12 = vadd.f32 %v2438_v39, %v1165_v56  ;;  %v2439_v33 = vpop.f32.mrb[20].mxu1  ;;  %v2483_v34 = vpop.f32.mrb[14].mxu0  ;;  %v3460_v56 = vld [vmem:[#allocation16] sm:$0x3]  ;;  %v3143_v39 = vpack.c.bf16 %v1462_v32, %v1461_v55 }
 0x417   :  { %v2440_v53 = vpop.f32.mrb[21].mxu1  ;;  %v2484_v13 = vpop.f32.mrb[15].mxu0  ;;  %v304_v57 = vrot.slane %v3460_v56, %v303_v54  ;;  %v1669_v54 = vld [vmem:[#allocation22 + $0x20] sm:$0xff]  ;;  %v1670_v56 = vld [vmem:[#allocation22 + $0x28] sm:$0xff] }
 0x418   :  { %v1335_v15 = vadd.f32 %v2482_v14, %v1250_v12  ;;  %v2441_v9 = vadd.f32 %v2440_v53, %v2439_v33  ;;  %v2485_v16 = vadd.f32 %v2484_v13, %v2483_v34  ;;  %v1463_v14 = vld [vmem:[#allocation19 + $0xc0] sm:$0xff]  ;;  %v1464_v12 = vld [vmem:[#allocation19 + $0xc8] sm:$0xff]  ;;  %v1465_v34 = vld [vmem:[#allocation19 + $0xd0] sm:$0xff] }
 0x419   :  { %v384_v58 = vadd.f32 %v4255_v25, %v304_v57  ;;  %v378_v49 = vadd.f32 %v4251_v19, %v304_v57  ;;  %v1455_v19 = vld [vmem:[#allocation19 + $0x80] sm:$0xff]  ;;  %v3147_v33 = vpack.c.bf16 %v1464_v12, %v1463_v14  ;;  %v1466_v53 = vld [vmem:[#allocation19 + $0xd8] sm:$0xff]  ;;  %v3171_v57 = vpack.c.bf16 %v1670_v56, %v1669_v54 }
 0x41a   :  { %v1255_v60 = vadd.f32 %v2441_v9, %v1170_v17  ;;  %v2442_v46 = vpop.f32.mrb[22].mxu1  ;;  %v2486_v18 = vpop.f32.mrb[16].mxu0  ;;  %v3131_v42 = vpack.c.bf16 %v1456_v7, %v1455_v19  ;;  %v3151_v13 = vpack.c.bf16 %v1466_v53, %v1465_v34  ;;  %v1468_v9 = vld [vmem:[#allocation19 + $0xe8] sm:$0xff]  ;;  %v2279_v7 = vld [vmem:[#allocation20 + $0x1] ss:$0 sm:$0xff] }
 0x41b   :  { %v2443_v20 = vpop.f32.mrb[23].mxu1  ;;  %v2487_v21 = vpop.f32.mrb[17].mxu0  ;;  %v2260_v59 = vmul.f32 -1.442695, %v384_v58  ;;  %v2258_v30 = vmul.f32 -1.442695, %v378_v49 }
 0x41c   :  { %v1340_v26 = vadd.f32 %v2485_v16, %v1255_v60  ;;  %v2444_v24 = vadd.f32 %v2443_v20, %v2442_v46  ;;  %v2488_v27 = vadd.f32 %v2487_v21, %v2486_v18  ;;  %v1469_v60 = vld [vmem:[#allocation19 + $0xf0] sm:$0xff]  ;;  %v1470_v46 = vld [vmem:[#allocation19 + $0xf8] sm:$0xff]  ;;  %v2276_v20 = vld [vmem:[#allocation20] ss:$0 sm:$0xff] }
 0x41d   :  { %3396 = vpow2.f32 %v2260_v59  ;;  %v3159_v18 = vpack.c.bf16 %v1470_v46, %v1469_v60  ;;  %v1781_v60 = vld [vmem:[#allocation25 + $0x10] sm:$0xff]  ;;  %v1782_v46 = vld [vmem:[#allocation25 + $0x18] sm:$0xff] }
 0x41e   :  { %v1260_v6 = vadd.f32 %v2444_v24, %v1175_v5  ;;  %v2445_v28 = vpop.f32.mrb[24].mxu1  ;;  %v2489_v29 = vpop.f32.mrb[18].mxu0  ;;  %v3091_v31 = vpack.c.bf16 %v1340_v26, %v1335_v15  ;;  %3398 = vpow2.f32 %v2258_v30  ;;  %v1467_v15 = vld [vmem:[#allocation19 + $0xe0] sm:$0xff] }
 0x41f   :  { %v2446_v45 = vpop.f32.mrb[25].mxu1  ;;  %v2490_v35 = vpop.f32.mrb[19].mxu0  ;;  %v3155_v16 = vpack.c.bf16 %v1468_v9, %v1467_v15  ;;  %v1673_v30 = vld [vmem:[#allocation22 + $0x40] sm:$0xff]  ;;  %v1780_v9 = vld [vmem:[#allocation25 + $0x8] sm:$0xff] }
 0x420   :  { %v1345_v40 = vadd.f32 %v2488_v27, %v1260_v6  ;;  %v2447_v22 = vadd.f32 %v2446_v45, %v2445_v28  ;;  %v2491_v41 = vadd.f32 %v2490_v35, %v2489_v29  ;;  %3092 = vmatprep.subr.bf16.mxu1 %v3091_v31  ;;  %v1779_v15 = vld [vmem:[#allocation25] sm:$0xff] }
 0x421   :  { %3094 = vmatpush3.bf16.msra.mxu1 %v3091_v31 }
 0x422   :  { %v1265_v43 = vadd.f32 %v2447_v22, %v1180_v38  ;;  %v1459_v38 = vld [vmem:[#allocation19 + $0xa0] sm:$0xff] }
 0x423   :  { %v3139_v48 = vpack.c.bf16 %v1460_v11, %v1459_v38 }
 0x424   :  { %v1350_v47 = vadd.f32 %v2491_v41, %v1265_v43 }
 0x426   :  { %v3095_v36 = vpack.c.bf16 %v1350_v47, %v1345_v40  ;;  %v1665_v47 = vld [vmem:[#allocation22] sm:$0xff] }
 0x427   :  { %v3397_v61 = vpop.eup %3396 }
 0x428   :  { %3096 = vmatprep.subr.bf16.mxu1 %v3095_v36  ;;  %v3399_v17 = vpop.eup %3398  ;;  %v402_v62 = vadd.f32 1.0, %v3397_v61  ;;  %v1674_v61 = vld [vmem:[#allocation22 + $0x48] sm:$0xff] }
 0x429   :  { %3098 = vmatpush3.bf16.msra.mxu1 %v3095_v36  ;;  %v400_v63 = vadd.f32 1.0, %v3399_v17  ;;  %v1666_v36 = vld [vmem:[#allocation22 + $0x8] sm:$0xff]  ;;  %v3179_v17 = vpack.c.bf16 %v1674_v61, %v1673_v30 }
 0x42a   :  { %3400 = vrcp.f32 %v402_v62  ;;  %3132 = vmatprep.subr.bf16.mxu1 %v3131_v42  ;;  %v1675_v62 = vld [vmem:[#allocation22 + $0x50] sm:$0xff] }
 0x42b   :  { %3402 = vrcp.f32 %v400_v63  ;;  %v1676_v63 = vld [vmem:[#allocation22 + $0x58] sm:$0xff] }
 0x42c   :  { %2666 = vmatmul.mubr.msk.f32.vlgmr.msra.gmra.mrb[26].mxu1 %vm1355_vm7, %v1354_v50  ;;  %v3163_v50 = vpack.c.bf16 %v1666_v36, %v1665_v47  ;;  %v2282_v36 = vld [vmem:[#allocation23] ss:$0 sm:$0xff] }
 0x42d   :  { %3134 = vmatpush3.bf16.msra.mxu1 %v3131_v42 }
 0x42e   :  { %3136 = vmatprep.subr.bf16.mxu1 %v3135_v44  ;;  %3164 = vmatprep.subr.bf16.mxu0 %v3163_v50 }
 0x431   :  { %3138 = vmatpush3.bf16.msra.mxu1 %v3135_v44 }
 0x432   :  { %3140 = vmatprep.subr.bf16.mxu1 %v3139_v48 }
 0x434   :  { %v3401_v1 = vpop.eup %3400 }
 0x435   :  { %v3403_v2 = vpop.eup %3402  ;;  %v414_v3 = vmul.f32 %v3401_v1, %v384_v58  ;;  %3142 = vmatpush3.bf16.msra.mxu1 %v3139_v48  ;;  %v1671_v58 = vld [vmem:[#allocation22 + $0x30] sm:$0xff]  ;;  %v3183_v1 = vpack.c.bf16 %v1676_v63, %v1675_v62 }
 0x436   :  { %v412_v4 = vmul.f32 %v3403_v2, %v378_v49  ;;  %3144 = vmatprep.subr.bf16.mxu1 %v3143_v39  ;;  %v1672_v49 = vld [vmem:[#allocation22 + $0x38] sm:$0xff]  ;;  %v1677_v2 = vld [vmem:[#allocation22 + $0x60] sm:$0xff] }
 0x437   :  { %v3175_v59 = vpack.c.bf16 %v1672_v49, %v1671_v58  ;;  %v3461_v63 = vld [vmem:[#allocation2] sm:$0xff] }
 0x439   :  { %3146 = vmatpush3.bf16.msra.mxu1 %v3143_v39 }
 0x43a   :  { %3148 = vmatprep.subr.bf16.mxu1 %v3147_v33 }
 0x43d   :  { %3150 = vmatpush3.bf16.msra.mxu1 %v3147_v33 }
 0x43e   :  { %3152 = vmatprep.subr.bf16.mxu1 %v3151_v13 }
 0x441   :  { %3154 = vmatpush3.bf16.msra.mxu1 %v3151_v13 }
 0x442   :  { %3156 = vmatprep.subr.bf16.mxu1 %v3155_v16 }
 0x445   :  { %3158 = vmatpush3.bf16.msra.mxu1 %v3155_v16  ;;  %v3195_v16 = vpack.c.bf16 %v1780_v9, %v1779_v15  ;;  %v1809_v15 = vld [vmem:[#allocation25 + $0xf0] sm:$0xff]  ;;  %v1810_v9 = vld [vmem:[#allocation25 + $0xf8] sm:$0xff] }
 0x446   :  { %3160 = vmatprep.subr.bf16.mxu1 %v3159_v18 }
 0x449   :  { %3162 = vmatpush3.bf16.msra.mxu1 %v3159_v18  ;;  %v3199_v18 = vpack.c.bf16 %v1782_v46, %v1781_v60  ;;  %v2285_v60 = vld [vmem:[#allocation26] ss:$0 sm:$0xff] }
 0x44a   :  { %3196 = vmatprep.subr.bf16.mxu1 %v3195_v16 }
 0x4ff   :  { %v2667_v10 = vpop.f32.mrb[26].mxu1 }
 0x500   :  { %v4389_v5 = vadd.f32 %v2667_v10, %v414_v3  ;;  %v1428_v25 = vpop.f32.mrb[27].mxu1  ;;  %v1678_v3 = vld [vmem:[#allocation22 + $0x68] sm:$0xff] }
 0x501   :  { %v4391_v23 = vadd.f32 %v1428_v25, %v412_v4  ;;  %v3187_v10 = vpack.c.bf16 %v1678_v3, %v1677_v2  ;;  %v1679_v4 = vld [vmem:[#allocation22 + $0x70] sm:$0xff]  ;;  %v1680_v25 = vld [vmem:[#allocation22 + $0x78] sm:$0xff] }
 0x502   :  { %v3191_v19 = vpack.c.bf16 %v1680_v25, %v1679_v4  ;;  %v3462_v2 = vld [vmem:[#allocation2 + $0x8] sm:$0xff]  ;;  %v1796_v4 = vld [vmem:[#allocation25 + $0x88] sm:$0xff] }
 0x503   :  { %2700 = vmatprep.mubr.f32.mxu0 %v4391_v23 }
 0x504   :  { %2701 = vmatmul.mubr.f32.vlgmr.msra.gmra.mrb[20].mxu0 %v4389_v5 }
 0x505   :  { %3166 = vmatpush3.bf16.msra.mxu0 %v3163_v50 }
 0x506   :  { %3168 = vmatprep.subr.bf16.mxu0 %v3167_v52 }
 0x509   :  { %3170 = vmatpush3.bf16.msra.mxu0 %v3167_v52 }
 0x50a   :  { %3172 = vmatprep.subr.bf16.mxu0 %v3171_v57 }
 0x50d   :  { %3174 = vmatpush3.bf16.msra.mxu0 %v3171_v57 }
 0x50e   :  { %3176 = vmatprep.subr.bf16.mxu0 %v3175_v59 }
 0x511   :  { %3178 = vmatpush3.bf16.msra.mxu0 %v3175_v59 }
 0x512   :  { %3180 = vmatprep.subr.bf16.mxu0 %v3179_v17 }
 0x515   :  { %3182 = vmatpush3.bf16.msra.mxu0 %v3179_v17 }
 0x516   :  { %3184 = vmatprep.subr.bf16.mxu0 %v3183_v1 }
 0x519   :  { %3186 = vmatpush3.bf16.msra.mxu0 %v3183_v1 }
 0x51a   :  { %3188 = vmatprep.subr.bf16.mxu0 %v3187_v10 }
 0x51d   :  { %3190 = vmatpush3.bf16.msra.mxu0 %v3187_v10  ;;  %v1795_v10 = vld [vmem:[#allocation25 + $0x80] sm:$0xff] }
 0x51e   :  { %3192 = vmatprep.subr.bf16.mxu0 %v3191_v19  ;;  %v3227_v25 = vpack.c.bf16 %v1796_v4, %v1795_v10  ;;  %v2288_v4 = vld [vmem:[#allocation26 + $0x1] ss:$0 sm:$0xff] }
 0x521   :  { %3194 = vmatpush3.bf16.msra.mxu0 %v3191_v19  ;;  %v1797_v19 = vld [vmem:[#allocation25 + $0x90] sm:$0xff] }
 0x522   :  { %3228 = vmatprep.subr.bf16.mxu0 %v3227_v25 }
 0x5d7   :  { %v2702_v21 = vpop.f32.mrb[20].mxu0 }
 0x5d8   :  { %v1551_v26 = vadd.f32 %v2702_v21, %v2276_v20  ;;  %v1545_v24 = vpop.f32.mrb[21].mxu0  ;;  %v1784_v21 = vld [vmem:[#allocation25 + $0x28] sm:$0xff] }
 0x5d9   :  { %v1546_v27 = vadd.f32 %v2276_v20, %v1545_v24  ;;  %v1783_v20 = vld [vmem:[#allocation25 + $0x20] sm:$0xff]  ;;  %v1786_v24 = vld [vmem:[#allocation25 + $0x38] sm:$0xff] }
 0x5da   :  { %v2278_v6 = vmul.f32 -1.442695, %v1551_v26 }
 0x5db   :  { %v2277_v28 = vmul.f32 -1.442695, %v1546_v27 }
 0x5dc   :  { %3404 = vpow2.f32 %v2278_v6  ;;  %v1788_v6 = vld [vmem:[#allocation25 + $0x48] sm:$0xff] }
 0x5dd   :  { %3406 = vpow2.f32 %v2277_v28 }
 0x5e6   :  { %v3405_v29 = vpop.eup %3404 }
 0x5e7   :  { %v3407_v31 = vpop.eup %3406  ;;  %v1561_v45 = vadd.f32 1.0, %v3405_v29  ;;  %v1789_v29 = vld [vmem:[#allocation25 + $0x50] sm:$0xff] }
 0x5e8   :  { %v1560_v35 = vadd.f32 1.0, %v3407_v31  ;;  %v1790_v31 = vld [vmem:[#allocation25 + $0x58] sm:$0xff] }
 0x5e9   :  { %3408 = vrcp.f32 %v1561_v45  ;;  %v3215_v45 = vpack.c.bf16 %v1790_v31, %v1789_v29 }
 0x5ea   :  { %3410 = vrcp.f32 %v1560_v35  ;;  %v1791_v35 = vld [vmem:[#allocation25 + $0x60] sm:$0xff] }
 0x5f3   :  { %v3409_v40 = vpop.eup %3408 }
 0x5f4   :  { %v3411_v22 = vpop.eup %3410  ;;  %v1567_v43 = vmul.f32 %v3409_v40, %v1551_v26  ;;  %v3203_v26 = vpack.c.bf16 %v1784_v21, %v1783_v20  ;;  %v1792_v40 = vld [vmem:[#allocation25 + $0x68] sm:$0xff] }
 0x5f5   :  { %v1566_v41 = vmul.f32 %v3411_v22, %v1546_v27  ;;  %v1787_v27 = vld [vmem:[#allocation25 + $0x40] sm:$0xff]  ;;  %v3219_v22 = vpack.c.bf16 %v1792_v40, %v1791_v35  ;;  %v1812_v40 = vld [vmem:[#allocation25 + $0x108] sm:$0xff] }
 0x5f6   :  { %v3211_v28 = vpack.c.bf16 %v1788_v6, %v1787_v27  ;;  %v1811_v35 = vld [vmem:[#allocation25 + $0x100] sm:$0xff] }
 0x5f7   :  { %2735 = vmatprep.mubr.f32.mxu1 %v1566_v41  ;;  %v1793_v41 = vld [vmem:[#allocation25 + $0x70] sm:$0xff] }
 0x5f8   :  { %2736 = vmatmul.mubr.f32.vlgmr.msra.gmra.mrb[28].mxu1 %v1567_v43  ;;  %v1794_v43 = vld [vmem:[#allocation25 + $0x78] sm:$0xff] }
 0x5f9   :  { %3198 = vmatpush3.bf16.msra.mxu1 %v3195_v16  ;;  %v3223_v47 = vpack.c.bf16 %v1794_v43, %v1793_v41  ;;  %v3255_v16 = vpack.c.bf16 %v1810_v9, %v1809_v15  ;;  %v1813_v41 = vld [vmem:[#allocation25 + $0x110] sm:$0xff]  ;;  %v1814_v43 = vld [vmem:[#allocation25 + $0x118] sm:$0xff] }
 0x5fa   :  { %3200 = vmatprep.subr.bf16.mxu1 %v3199_v18  ;;  %v1829_v15 = vld [vmem:[#allocation25 + $0x190] sm:$0xff]  ;;  %v1830_v9 = vld [vmem:[#allocation25 + $0x198] sm:$0xff] }
 0x5fd   :  { %3202 = vmatpush3.bf16.msra.mxu1 %v3199_v18 }
 0x5fe   :  { %3204 = vmatprep.subr.bf16.mxu1 %v3203_v26 }
 0x601   :  { %3206 = vmatpush3.bf16.msra.mxu1 %v3203_v26 }
 0x6cb   :  { %v2737_v42 = vpop.f32.mrb[28].mxu1 }
 0x6cc   :  { %v1646_v8 = vadd.f32 %v2737_v42, %v2279_v7  ;;  %v1640_v0 = vpop.f32.mrb[29].mxu1 }
 0x6cd   :  { %v1641_v44 = vadd.f32 %v2279_v7, %v1640_v0  ;;  %v1798_v7 = vld [vmem:[#allocation25 + $0x98] sm:$0xff]  ;;  %v1800_v0 = vld [vmem:[#allocation25 + $0xa8] sm:$0xff] }
 0x6ce   :  { %v2281_v38 = vmul.f32 -1.442695, %v1646_v8  ;;  %v3231_v42 = vpack.c.bf16 %v1798_v7, %v1797_v19 }
 0x6cf   :  { %v2280_v11 = vmul.f32 -1.442695, %v1641_v44 }
 0x6d0   :  { %3412 = vpow2.f32 %v2281_v38  ;;  %v1801_v38 = vld [vmem:[#allocation25 + $0xb0] sm:$0xff] }
 0x6d1   :  { %3414 = vpow2.f32 %v2280_v11  ;;  %v1802_v11 = vld [vmem:[#allocation25 + $0xb8] sm:$0xff] }
 0x6da   :  { %v3413_v48 = vpop.eup %3412 }
 0x6db   :  { %v3415_v55 = vpop.eup %3414  ;;  %v1656_v32 = vadd.f32 1.0, %v3413_v48  ;;  %v3239_v48 = vpack.c.bf16 %v1802_v11, %v1801_v38 }
 0x6dc   :  { %v1655_v39 = vadd.f32 1.0, %v3415_v55  ;;  %v1803_v55 = vld [vmem:[#allocation25 + $0xc0] sm:$0xff] }
 0x6dd   :  { %3416 = vrcp.f32 %v1656_v32  ;;  %v1804_v32 = vld [vmem:[#allocation25 + $0xc8] sm:$0xff] }
 0x6de   :  { %3418 = vrcp.f32 %v1655_v39  ;;  %v3243_v39 = vpack.c.bf16 %v1804_v32, %v1803_v55 }
 0x6e7   :  { %v3417_v14 = vpop.eup %3416 }
 0x6e8   :  { %v3419_v12 = vpop.eup %3418  ;;  %v1662_v33 = vmul.f32 %v3417_v14, %v1646_v8  ;;  %v1799_v8 = vld [vmem:[#allocation25 + $0xa0] sm:$0xff]  ;;  %v1805_v14 = vld [vmem:[#allocation25 + $0xd0] sm:$0xff] }
 0x6e9   :  { %v1661_v34 = vmul.f32 %v3419_v12, %v1641_v44  ;;  %v3235_v44 = vpack.c.bf16 %v1800_v0, %v1799_v8  ;;  %v1806_v12 = vld [vmem:[#allocation25 + $0xd8] sm:$0xff] }
 0x6ea   :  { %v1664_v13 = vadd.f32 %v1662_v33, %v4389_v5  ;;  %v3247_v33 = vpack.c.bf16 %v1806_v12, %v1805_v14 }
 0x6eb   :  { %v1663_v53 = vadd.f32 %v1661_v34, %v4391_v23  ;;  %v1785_v23 = vld [vmem:[#allocation25 + $0x30] sm:$0xff]  ;;  %v1807_v34 = vld [vmem:[#allocation25 + $0xe0] sm:$0xff] }
 0x6ec   :  { %v3207_v5 = vpack.c.bf16 %v1786_v24, %v1785_v23 }
 0x6ed   :  { %2770 = vmatprep.mubr.f32.mxu0 %v1663_v53  ;;  %v1808_v53 = vld [vmem:[#allocation25 + $0xe8] sm:$0xff] }
 0x6ee   :  { %2771 = vmatmul.mubr.f32.vlgmr.msra.gmra.mrb[22].mxu0 %v1664_v13  ;;  %3208 = vmatprep.subr.bf16.mxu1 %v3207_v5  ;;  %v3251_v13 = vpack.c.bf16 %v1808_v53, %v1807_v34  ;;  %v1827_v34 = vld [vmem:[#allocation25 + $0x180] sm:$0xff]  ;;  %v1828_v53 = vld [vmem:[#allocation25 + $0x188] sm:$0xff] }
 0x6ef   :  { %3210 = vmatpush3.bf16.msra.mxu1 %v3207_v5  ;;  %3230 = vmatpush3.bf16.msra.mxu0 %v3227_v25 }
 0x6f0   :  { %3212 = vmatprep.subr.bf16.mxu1 %v3211_v28  ;;  %3232 = vmatprep.subr.bf16.mxu0 %v3231_v42 }
 0x6f3   :  { %3214 = vmatpush3.bf16.msra.mxu1 %v3211_v28  ;;  %3234 = vmatpush3.bf16.msra.mxu0 %v3231_v42 }
 0x6f4   :  { %3216 = vmatprep.subr.bf16.mxu1 %v3215_v45  ;;  %3236 = vmatprep.subr.bf16.mxu0 %v3235_v44 }
 0x6f7   :  { %3218 = vmatpush3.bf16.msra.mxu1 %v3215_v45  ;;  %3238 = vmatpush3.bf16.msra.mxu0 %v3235_v44 }
 0x6f8   :  { %3220 = vmatprep.subr.bf16.mxu1 %v3219_v22  ;;  %3240 = vmatprep.subr.bf16.mxu0 %v3239_v48 }
 0x6fb   :  { %3222 = vmatpush3.bf16.msra.mxu1 %v3219_v22  ;;  %3242 = vmatpush3.bf16.msra.mxu0 %v3239_v48  ;;  %v3259_v22 = vpack.c.bf16 %v1812_v40, %v1811_v35  ;;  %v2291_v40 = vld [vmem:[#allocation26 + $0x2] ss:$0 sm:$0xff] }
 0x6fc   :  { %3224 = vmatprep.subr.bf16.mxu1 %v3223_v47  ;;  %3244 = vmatprep.subr.bf16.mxu0 %v3243_v39 }
 0x6ff   :  { %3226 = vmatpush3.bf16.msra.mxu1 %v3223_v47  ;;  %3246 = vmatpush3.bf16.msra.mxu0 %v3243_v39  ;;  %v3263_v47 = vpack.c.bf16 %v1814_v43, %v1813_v41 }
 0x700   :  { %3248 = vmatprep.subr.bf16.mxu0 %v3247_v33  ;;  %3260 = vmatprep.subr.bf16.mxu1 %v3259_v22 }
 0x703   :  { %3250 = vmatpush3.bf16.msra.mxu0 %v3247_v33 }
 0x704   :  { %3252 = vmatprep.subr.bf16.mxu0 %v3251_v13 }
 0x707   :  { %3254 = vmatpush3.bf16.msra.mxu0 %v3251_v13  ;;  %v3291_v13 = vpack.c.bf16 %v1828_v53, %v1827_v34 }
 0x708   :  { %3256 = vmatprep.subr.bf16.mxu0 %v3255_v16 }
 0x70b   :  { %3258 = vmatpush3.bf16.msra.mxu0 %v3255_v16  ;;  %v3295_v16 = vpack.c.bf16 %v1830_v9, %v1829_v15 }
 0x70c   :  { %3292 = vmatprep.subr.bf16.mxu0 %v3291_v13 }
 0x7c1   :  { %v2772_v50 = vpop.f32.mrb[22].mxu0 }
 0x7c2   :  { %v1760_v37 = vadd.f32 %v2772_v50, %v2282_v36  ;;  %v1754_v51 = vpop.f32.mrb[23].mxu0  ;;  %v1816_v50 = vld [vmem:[#allocation25 + $0x128] sm:$0xff] }
 0x7c3   :  { %v1755_v52 = vadd.f32 %v2282_v36, %v1754_v51  ;;  %v1815_v36 = vld [vmem:[#allocation25 + $0x120] sm:$0xff]  ;;  %v1817_v51 = vld [vmem:[#allocation25 + $0x130] sm:$0xff] }
 0x7c4   :  { %v2284_v54 = vmul.f32 -1.442695, %v1760_v37 }
 0x7c5   :  { %v2283_v56 = vmul.f32 -1.442695, %v1755_v52 }
 0x7c6   :  { %3420 = vpow2.f32 %v2284_v54 }
 0x7c7   :  { %3422 = vpow2.f32 %v2283_v56  ;;  %v1819_v56 = vld [vmem:[#allocation25 + $0x140] sm:$0xff] }
 0x7d0   :  { %v3421_v57 = vpop.eup %3420 }
 0x7d1   :  { %v3423_v58 = vpop.eup %3422  ;;  %v1770_v49 = vadd.f32 1.0, %v3421_v57  ;;  %v1820_v57 = vld [vmem:[#allocation25 + $0x148] sm:$0xff] }
 0x7d2   :  { %v1769_v59 = vadd.f32 1.0, %v3423_v58  ;;  %v3275_v58 = vpack.c.bf16 %v1820_v57, %v1819_v56 }
 0x7d3   :  { %3424 = vrcp.f32 %v1770_v49  ;;  %v1821_v49 = vld [vmem:[#allocation25 + $0x150] sm:$0xff] }
 0x7d4   :  { %3426 = vrcp.f32 %v1769_v59  ;;  %v1822_v59 = vld [vmem:[#allocation25 + $0x158] sm:$0xff] }
 0x7dd   :  { %v3425_v30 = vpop.eup %3424 }
 0x7de   :  { %v3427_v61 = vpop.eup %3426  ;;  %v1776_v17 = vmul.f32 %v3425_v30, %v1760_v37  ;;  %v3267_v37 = vpack.c.bf16 %v1816_v50, %v1815_v36  ;;  %v3279_v30 = vpack.c.bf16 %v1822_v59, %v1821_v49  ;;  %v2294_v59 = vld [vmem:[#allocation26 + $0x3] ss:$0 sm:$0xff] }
 0x7df   :  { %v1775_v62 = vmul.f32 %v3427_v61, %v1755_v52  ;;  %v1818_v52 = vld [vmem:[#allocation25 + $0x138] sm:$0xff]  ;;  %v1823_v61 = vld [vmem:[#allocation25 + $0x160] sm:$0xff] }
 0x7e0   :  { %v4399_v3 = vadd.f32 %v3462_v2, %v1776_v17  ;;  %v3271_v54 = vpack.c.bf16 %v1818_v52, %v1817_v51  ;;  %v1824_v17 = vld [vmem:[#allocation25 + $0x168] sm:$0xff]  ;;  %v1826_v2 = vld [vmem:[#allocation25 + $0x178] sm:$0xff] }
 0x7e1   :  { %v4397_v1 = vadd.f32 %v3461_v63, %v1775_v62  ;;  %v3283_v62 = vpack.c.bf16 %v1824_v17, %v1823_v61  ;;  %v1825_v63 = vld [vmem:[#allocation25 + $0x170] sm:$0xff] }
 0x7e2   :  { %v3287_v10 = vpack.c.bf16 %v1826_v2, %v1825_v63 }
 0x7e3   :  { %2805 = vmatprep.mubr.f32.mxu1 %v4397_v1 }
 0x7e4   :  { %2806 = vmatmul.mubr.f32.vlgmr.msra.gmra.mrb[30].mxu1 %v4399_v3 }
 0x7e5   :  { %3262 = vmatpush3.bf16.msra.mxu1 %v3259_v22 }
 0x7e6   :  { %3264 = vmatprep.subr.bf16.mxu1 %v3263_v47 }
 0x7e9   :  { %3266 = vmatpush3.bf16.msra.mxu1 %v3263_v47 }
 0x7ea   :  { %3268 = vmatprep.subr.bf16.mxu1 %v3267_v37 }
 0x7ed   :  { %3270 = vmatpush3.bf16.msra.mxu1 %v3267_v37 }
 0x7ee   :  { %3272 = vmatprep.subr.bf16.mxu1 %v3271_v54 }
 0x7f1   :  { %3274 = vmatpush3.bf16.msra.mxu1 %v3271_v54 }
 0x7f2   :  { %3276 = vmatprep.subr.bf16.mxu1 %v3275_v58 }
 0x7f5   :  { %3278 = vmatpush3.bf16.msra.mxu1 %v3275_v58 }
 0x7f6   :  { %3280 = vmatprep.subr.bf16.mxu1 %v3279_v30 }
 0x7f9   :  { %3282 = vmatpush3.bf16.msra.mxu1 %v3279_v30 }
 0x7fa   :  { %3284 = vmatprep.subr.bf16.mxu1 %v3283_v62 }
 0x7fd   :  { %3286 = vmatpush3.bf16.msra.mxu1 %v3283_v62 }
 0x7fe   :  { %3288 = vmatprep.subr.bf16.mxu1 %v3287_v10 }
 0x801   :  { %3290 = vmatpush3.bf16.msra.mxu1 %v3287_v10 }
 0x8b7   :  { %v2807_v46 = vpop.f32.mrb[30].mxu1 }
 0x8b8   :  { %v1925_v18 = vadd.f32 %v2807_v46, %v2285_v60  ;;  %v1919_v20 = vpop.f32.mrb[31].mxu1 }
 0x8b9   :  { %v1920_v21 = vadd.f32 %v2285_v60, %v1919_v20  ;;  %v1831_v60 = vld [vmem:[#allocation25 + $0x1a0] sm:$0xff] }
 0x8ba   :  { %v2287_v26 = vmul.f32 -1.442695, %v1925_v18 }
 0x8bb   :  { %v2286_v23 = vmul.f32 -1.442695, %v1920_v21 }
 0x8bc   :  { %3428 = vpow2.f32 %v2287_v26  ;;  %v1836_v26 = vld [vmem:[#allocation25 + $0x1c8] sm:$0xff] }
 0x8bd   :  { %3430 = vpow2.f32 %v2286_v23 }
 0x8c6   :  { %v3429_v24 = vpop.eup %3428 }
 0x8c7   :  { %v3431_v5 = vpop.eup %3430  ;;  %v1935_v27 = vadd.f32 1.0, %v3429_v24  ;;  %v1837_v24 = vld [vmem:[#allocation25 + $0x1d0] sm:$0xff] }
 0x8c8   :  { %v1934_v6 = vadd.f32 1.0, %v3431_v5  ;;  %v1838_v5 = vld [vmem:[#allocation25 + $0x1d8] sm:$0xff] }
 0x8c9   :  { %3432 = vrcp.f32 %v1935_v27  ;;  %v3311_v27 = vpack.c.bf16 %v1838_v5, %v1837_v24 }
 0x8ca   :  { %3434 = vrcp.f32 %v1934_v6  ;;  %v1839_v6 = vld [vmem:[#allocation25 + $0x1e0] sm:$0xff] }
 0x8d3   :  { %v3433_v28 = vpop.eup %3432 }
 0x8d4   :  { %v3435_v29 = vpop.eup %3434  ;;  %v1941_v45 = vmul.f32 %v3433_v28, %v1925_v18  ;;  %v1834_v18 = vld [vmem:[#allocation25 + $0x1b8] sm:$0xff]  ;;  %v1840_v28 = vld [vmem:[#allocation25 + $0x1e8] sm:$0xff] }
 0x8d5   :  { %v1940_v31 = vmul.f32 %v3435_v29, %v1920_v21  ;;  %v1835_v21 = vld [vmem:[#allocation25 + $0x1c0] sm:$0xff]  ;;  %v3315_v29 = vpack.c.bf16 %v1840_v28, %v1839_v6 }
 0x8d6   :  { %v3307_v23 = vpack.c.bf16 %v1836_v26, %v1835_v21 }
 0x8d7   :  { %2840 = vmatprep.mubr.f32.mxu0 %v1940_v31  ;;  %v1841_v31 = vld [vmem:[#allocation25 + $0x1f0] sm:$0xff] }
 0x8d8   :  { %2841 = vmatmul.mubr.f32.vlgmr.msra.gmra.mrb[24].mxu0 %v1941_v45  ;;  %v1842_v45 = vld [vmem:[#allocation25 + $0x1f8] sm:$0xff] }
 0x8d9   :  { %3294 = vmatpush3.bf16.msra.mxu0 %v3291_v13  ;;  %v3319_v35 = vpack.c.bf16 %v1842_v45, %v1841_v31 }
 0x8da   :  { %3296 = vmatprep.subr.bf16.mxu0 %v3295_v16 }
 0x8dd   :  { %3298 = vmatpush3.bf16.msra.mxu0 %v3295_v16 }
 0x9ab   :  { %v2842_v25 = vpop.f32.mrb[24].mxu0 }
 0x9ac   :  { %v2020_v19 = vadd.f32 %v2842_v25, %v2288_v4  ;;  %v2014_v7 = vpop.f32.mrb[25].mxu0 }
 0x9ad   :  { %v2015_v42 = vadd.f32 %v2288_v4, %v2014_v7 }
 0x9ae   :  { %v2290_v8 = vmul.f32 -1.442695, %v2020_v19 }
 0x9af   :  { %v2289_v0 = vmul.f32 -1.442695, %v2015_v42 }
 0x9b0   :  { %3436 = vpow2.f32 %v2290_v8 }
 0x9b1   :  { %3438 = vpow2.f32 %v2289_v0 }
 0x9ba   :  { %v3437_v44 = vpop.eup %3436 }
 0x9bb   :  { %v3439_v38 = vpop.eup %3438  ;;  %v2030_v11 = vadd.f32 1.0, %v3437_v44 }
 0x9bc   :  { %v2029_v48 = vadd.f32 1.0, %v3439_v38 }
 0x9bd   :  { %3440 = vrcp.f32 %v2030_v11 }
 0x9be   :  { %3442 = vrcp.f32 %v2029_v48 }
 0x9c7   :  { %v3441_v55 = vpop.eup %3440 }
 0x9c8   :  { %v3443_v32 = vpop.eup %3442  ;;  %v2036_v39 = vmul.f32 %v3441_v55, %v2020_v19 }
 0x9c9   :  { %v2035_v14 = vmul.f32 %v3443_v32, %v2015_v42 }
 0x9ca   :  { %v4407_v33 = vadd.f32 %v2036_v39, %v4399_v3  ;;  %v1833_v3 = vld [vmem:[#allocation25 + $0x1b0] sm:$0xff] }
 0x9cb   :  { %v4404_v12 = vadd.f32 %v2035_v14, %v4397_v1  ;;  %v1832_v1 = vld [vmem:[#allocation25 + $0x1a8] sm:$0xff]  ;;  %v3303_v20 = vpack.c.bf16 %v1834_v18, %v1833_v3 }
 0x9cc   :  { %v3299_v46 = vpack.c.bf16 %v1832_v1, %v1831_v60 }
 0x9cd   :  { %2875 = vmatprep.mubr.f32.mxu1 %v4404_v12 }
 0x9ce   :  { %2876 = vmatmul.mubr.f32.vlgmr.msra.gmra.mrb[32].mxu1 %v4407_v33  ;;  %3300 = vmatprep.subr.bf16.mxu0 %v3299_v46 }
 0x9cf   :  { %3302 = vmatpush3.bf16.msra.mxu0 %v3299_v46 }
 0x9d0   :  { %3304 = vmatprep.subr.bf16.mxu0 %v3303_v20 }
 0x9d3   :  { %3306 = vmatpush3.bf16.msra.mxu0 %v3303_v20 }
 0x9d4   :  { %3308 = vmatprep.subr.bf16.mxu0 %v3307_v23 }
 0x9d7   :  { %3310 = vmatpush3.bf16.msra.mxu0 %v3307_v23 }
 0x9d8   :  { %3312 = vmatprep.subr.bf16.mxu0 %v3311_v27 }
 0x9db   :  { %3314 = vmatpush3.bf16.msra.mxu0 %v3311_v27 }
 0x9dc   :  { %3316 = vmatprep.subr.bf16.mxu0 %v3315_v29 }
 0x9df   :  { %3318 = vmatpush3.bf16.msra.mxu0 %v3315_v29 }
 0x9e0   :  { %3320 = vmatprep.subr.bf16.mxu0 %v3319_v35 }
 0x9e3   :  { %3322 = vmatpush3.bf16.msra.mxu0 %v3319_v35 }
 0xaa1   :  { %v2877_v22 = vpop.f32.mrb[32].mxu1 }
 0xaa2   :  { %v2117_v41 = vadd.f32 %v2877_v22, %v2291_v40  ;;  %v2111_v43 = vpop.f32.mrb[33].mxu1 }
 0xaa3   :  { %v2112_v47 = vadd.f32 %v2291_v40, %v2111_v43 }
 0xaa4   :  { %v2293_v36 = vmul.f32 -1.442695, %v2117_v41 }
 0xaa5   :  { %v2292_v50 = vmul.f32 -1.442695, %v2112_v47 }
 0xaa6   :  { %3444 = vpow2.f32 %v2293_v36 }
 0xaa7   :  { %3446 = vpow2.f32 %v2292_v50 }
 0xab0   :  { %v3445_v37 = vpop.eup %3444 }
 0xab1   :  { %v3447_v51 = vpop.eup %3446  ;;  %v2127_v52 = vadd.f32 1.0, %v3445_v37 }
 0xab2   :  { %v2126_v54 = vadd.f32 1.0, %v3447_v51 }
 0xab3   :  { %3448 = vrcp.f32 %v2127_v52 }
 0xab4   :  { %3450 = vrcp.f32 %v2126_v54 }
 0xabd   :  { %v3449_v56 = vpop.eup %3448 }
 0xabe   :  { %v3451_v57 = vpop.eup %3450  ;;  %v2133_v49 = vmul.f32 %v3449_v56, %v2117_v41 }
 0xabf   :  { %v2132_v58 = vmul.f32 %v3451_v57, %v2112_v47 }
 0xac1   :  { %2910 = vmatprep.mubr.f32.mxu0 %v2132_v58 }
 0xac2   :  { %2911 = vmatmul.mubr.f32.vlgmr.msra.gmra.mrb[26].mxu0 %v2133_v49 }
 0xb95   :  { %v2912_v30 = vpop.f32.mrb[26].mxu0 }
 0xb96   :  { %v2212_v61 = vadd.f32 %v2912_v30, %v2294_v59  ;;  %v2206_v17 = vpop.f32.mrb[27].mxu0 }
 0xb97   :  { %v2207_v62 = vadd.f32 %v2294_v59, %v2206_v17 }
 0xb98   :  { %v2296_v63 = vmul.f32 -1.442695, %v2212_v61 }
 0xb99   :  { %v2295_v2 = vmul.f32 -1.442695, %v2207_v62 }
 0xb9a   :  { %3452 = vpow2.f32 %v2296_v63 }
 0xb9b   :  { %3454 = vpow2.f32 %v2295_v2 }
 0xba4   :  { %v3453_v10 = vpop.eup %3452 }
 0xba5   :  { %v3455_v4 = vpop.eup %3454  ;;  %v2222_v25 = vadd.f32 1.0, %v3453_v10 }
 0xba6   :  { %v2221_v19 = vadd.f32 1.0, %v3455_v4 }
 0xba7   :  { %3456 = vrcp.f32 %v2222_v25 }
 0xba8   :  { %3458 = vrcp.f32 %v2221_v19 }
 0xbb1   :  { %v3457_v7 = vpop.eup %3456 }
 0xbb2   :  { %v3459_v42 = vpop.eup %3458  ;;  %v2228_v8 = vmul.f32 %v3457_v7, %v2212_v61 }
 0xbb3   :  { %v2227_v0 = vmul.f32 %v3459_v42, %v2207_v62 }
 0xbb4   :  { %v2230_v44 = vadd.f32 %v2228_v8, %v4407_v33 }
 0xbb5   :  { %v2229_v38 = vadd.f32 %v2227_v0, %v4404_v12 }
 0xbb6   :  { %2232 = vst [vmem:[#allocation28 + $0x8] sm:$0xff] %v2230_v44 }
 0xbb7   :  { %2231 = vst [vmem:[#allocation28] sm:$0xff] %v2229_v38 }
 0xbb8   :  { %3826 = shalt.err (!%p3823_p6)
}
 0xbb9   :  { %s3827_s28 = scalar_lea.hbm %s4444_s16, 256 }
 0xbba   :  { %p3828_p7 = scmp.ne.s32.totalorder %s4444_s16, %s3827_s28  ;;  %p3831_p8 = scmp.lt.u32.totalorder %s3827_s28, %s4444_s16 }
 0xbbc   :  { %p3833_p9 = pnand %p3831_p8, %p3828_p7 }
 0xbbe   :  { %3836 = shalt.err (!%p3833_p9)
}
 0xbbf   :  { %2244 = dma.vmem_to_hbm [thread:$0]  %s2239_s20, 256, %s4444_s16, [#allocation4], %s3859_s18, %s3859_s18, %s3860_s19  }
 0xbc0   :  { %3855 = dma.done.wait [#allocation4], 256  }
 0xbc1   :  { %3856 = vsyncadd [#allocation4], 4294967040 }
 0xbc2   :  { %2248 = vsyncpa [#allocation3], 1 }
 0xbc3   :  { %2249 = vsyncpa [#allocation6], 1 }
 0xbc4   :  { %2250 = vsyncpa [#allocation9], 1 }
 0xbc5   :  { %2251 = vsyncpa [#allocation12], 1 }
 0xbc6   :  { %2252 = vsyncpa [#allocation15], 1 }
 0xbc7   :  { %2253 = vsyncpa [#allocation18], 1 }
 0xbc8   :  { %2254 = vsyncpa [#allocation21], 1 }
 0xbc9   :  { %2255 = vsyncpa [#allocation24], 1 }
 0xbca   :  { %2256 = vsyncpa [#allocation27], 1 }
 0xbcb   :  { %2257 = vsyncpa [#allocation4], 1 }

</bundles_post_ra>
